<compile_context>
chip_gen: v5e
topology: v5e:2x2
jax: 0.10.0
libtpu: 0.0.40
codegen_flags: <defaults>
</compile_context>

<pallas_src>
import math
import numpy as np
import jax
import jax.numpy as jnp
from jax.experimental import pallas as pl
from jax.experimental.pallas import tpu as pltpu

KSIZE = 11
PAD = KSIZE // 2
TOP = 8                    # sublane-aligned top halo rows (>= PAD, multiple of 8)
OFF = TOP - PAD            # shift between padded-scratch rows and output rows
SMOOTH = 1e-3


def make_grad_kernel(size=KSIZE):
    # numpy mirror of hoverfast.training_utils.grad_kernel
    v = np.arange(-size // 2 + 1, size // 2 + 1, dtype=np.float32)
    temp = np.outer(v, np.ones_like(v))
    stemp = temp * temp
    return (temp / (stemp + stemp.T + 1e-15)).astype(np.float32)  # (11, 11)


def build_col_toeplitz_fused(W, kmat):
    """(2, W, KSIZE*W): the 11 banded (W,W) matrices implementing the column
    direction of a 'same' cross-correlation, concatenated along the output
    axis so the whole column pass is ONE matmul per channel.
    Channel 0 uses kmat.T (PyTorch kernel.permute(0,1,3,2)), channel 1 kmat."""
    kmat = np.asarray(kmat, np.float32)
    mats = np.zeros((2, W, KSIZE * W), np.float32)
    cc = np.arange(W)[:, None]        # input column index
    xx = np.arange(W)[None, :]        # output column index
    j = cc - xx + PAD                 # kernel column tap
    valid = (j >= 0) & (j < KSIZE)
    jc = np.clip(j, 0, KSIZE - 1)
    for ch, k in enumerate([kmat.T, kmat]):
        for i in range(KSIZE):
            mats[ch, :, i * W:(i + 1) * W] = np.where(valid, k[i][jc], 0.0)
    return mats


def _vmem_capacity_bytes():
    try:
        info = pltpu.get_tpu_info()
        cap = getattr(info, "vmem_capacity_bytes", None)
        if cap:
            return int(cap)
    except Exception:
        pass
    return 64 << 20        # conservative fallback: v7x per-TensorCore VMEM


def _pick_batch_block(N, H, W):
    """Largest divisor of N with <= ~128x128 pixels per grid step."""
    nb = 1
    for d in range(1, N + 1):
        if N % d == 0 and d * H * W <= 128 * 128:
            nb = d
    return nb


def _pick_strip(H, W):
    """Row-strip size: multiple-of-8 divisor of H, ~<=4096 elements per temp."""
    cap_rows = max(8, min(64, (4096 // max(W, 1)) // 8 * 8))
    rs = H
    for cand in range(8, min(H, cap_rows) + 1, 8):
        if H % cand == 0:
            rs = cand
    return rs


def _build_kernel(C, H, W, NB, HPADF, RS, edge_weight, mxu_bf16):
    # edge_weight ** y_weight computed as exp(y_weight * log(edge_weight));
    # the module assumes edge_weight > 0 (true for all hoverfast configs).
    log_edge = float(math.log(edge_weight))
    nstrip = H // RS
    bot0 = TOP + H                       # first bottom-halo row (frame-local)

    def kernel(x_ref, y_ref, hvp_ref, hvt_ref, yw_ref, hw_ref, colmat_ref,
               cw_ref, sums_ref, pscr_ref, wk_ref):
        cw = [cw_ref[c] for c in range(C)]    # hoist SMEM scalar loads

        ce_acc = jnp.float32(0.0)
        hv_acc = jnp.float32(0.0)
        inse_acc = jnp.float32(0.0)
        l_acc = jnp.float32(0.0)
        r_acc = jnp.float32(0.0)

        for b in range(NB):
            base = b * HPADF
            # Zero ONLY the halo rows (interior is fully overwritten below).
            # Done every grid step: safe under "parallel" megacore sharding.
            pscr_ref[0, base:base + TOP, :] = jnp.zeros((TOP, W), jnp.float32)
            pscr_ref[1, base:base + TOP, :] = jnp.zeros((TOP, W), jnp.float32)
            pscr_ref[0, base + bot0:base + HPADF, :] = jnp.zeros((HPADF - bot0, W), jnp.float32)
            pscr_ref[1, base + bot0:base + HPADF, :] = jnp.zeros((HPADF - bot0, W), jnp.float32)

            for s in range(nstrip):
                r0 = s * RS
                y = y_ref[b, r0:r0 + RS, :]     # (RS, W) int32 labels
                yw = yw_ref[b, r0:r0 + RS, :]   # y_weight
                hw = hw_ref[b, r0:r0 + RS, :]   # hv_weight map

                # ----- fused max / argmax over classes (torch tie-break) -----
                xs = [x_ref[b, c, r0:r0 + RS, :] for c in range(C)]
                best = xs[0]
                pred = jnp.zeros((RS, W), jnp.int32)
                for c in range(1, C):
                    upd = xs[c] > best              # first-max wins (torch.argmax)
                    pred = jnp.where(upd, jnp.int32(c), pred)
                    best = jnp.where(upd, xs[c], best)

                # ----- weighted cross-entropy (reduction='none') -----
                se = jnp.zeros((RS, W), jnp.float32)
                for c in range(C):
                    se = se + jnp.exp(xs[c] - best)
                lse = best + jnp.log(se)
                logp_y = jnp.zeros((RS, W), jnp.float32)
                cw_y = jnp.zeros((RS, W), jnp.float32)   # class_weight[y]
                for c in range(C):
                    sel = (y == c).astype(jnp.float32)
                    logp_y = logp_y + sel * (xs[c] - lse)
                    cw_y = cw_y + sel * cw[c]
                ce_w = (-cw_y * logp_y) * jnp.exp(yw * log_edge)

                # ----- shared HV / grad weighting -----
                keep = jnp.where(jnp.logical_and(y == 0, pred == 1),
                                 jnp.float32(0.0), jnp.float32(1.0))
                wk = cw_y * hw * keep
                wk_ref[b, r0:r0 + RS, :] = wk        # staged for the grad stage

                # ----- HV MSE on the difference maps + aligned scratch fill -----
                d0 = hvp_ref[b, 0, r0:r0 + RS, :] - hvt_ref[b, 0, r0:r0 + RS, :]
                d1 = hvp_ref[b, 1, r0:r0 + RS, :] - hvt_ref[b, 1, r0:r0 + RS, :]
                # base, TOP and r0 are all multiples of 8 -> unmasked stores
                pscr_ref[0, base + TOP + r0:base + TOP + r0 + RS, :] = d0
                pscr_ref[1, base + TOP + r0:base + TOP + r0 + RS, :] = d1

                pred_f = pred.astype(jnp.float32)
                y_f = y.astype(jnp.float32)
                ce_acc = ce_acc + jnp.sum(ce_w)
                hv_acc = hv_acc + jnp.sum((d0 * d0 + d1 * d1) * wk)
                inse_acc = inse_acc + jnp.sum(pred_f * y_f)   # dice: inse
                l_acc = l_acc + jnp.sum(pred_f)               # dice: l
                r_acc = r_acc + jnp.sum(y_f)                  # dice: r

        # ----- 11x11 'same' conv of the DIFFERENCE maps on the MXU -----
        # conv is linear => conv(pred) - conv(true) == conv(pred - true).
        # ONE matmul per channel: (NB*HPADF, W) @ (W, 11*W), then 11 shifted
        # adds over the column blocks finish the row taps.
        lhs0 = pscr_ref[0]
        lhs1 = pscr_ref[1]
        if mxu_bf16:
            lhs0 = lhs0.astype(jnp.bfloat16)
            lhs1 = lhs1.astype(jnp.bfloat16)
        m0 = jnp.dot(lhs0, colmat_ref[0], preferred_element_type=jnp.float32)
        m1 = jnp.dot(lhs1, colmat_ref[1], preferred_element_type=jnp.float32)

        grad_acc = jnp.float32(0.0)
        for b in range(NB):
            base = b * HPADF
            for s in range(nstrip):
                r0 = s * RS
                a = base + OFF + r0
                e0 = m0[a:a + RS, 0:W]
                e1 = m1[a:a + RS, 0:W]
                for i in range(1, KSIZE):
                    e0 = e0 + m0[a + i:a + i + RS, i * W:(i + 1) * W]
                    e1 = e1 + m1[a + i:a + i + RS, i * W:(i + 1) * W]
                wk = wk_ref[b, r0:r0 + RS, :]
                grad_acc = grad_acc + jnp.sum((e0 * e0 + e1 * e1) * wk)

        # ----- per-step partial sums (one SMEM row per grid step) -----
        sums_ref[0, 0] = ce_acc
        sums_ref[0, 1] = hv_acc
        sums_ref[0, 2] = grad_acc
        sums_ref[0, 3] = inse_acc
        sums_ref[0, 4] = l_acc
        sums_ref[0, 5] = r_acc

    return kernel


def criterion_forward(x_pred, hvm_pred, y, hvmaps, y_weight, hv_weight_map,
                      class_weight, edge_weight, grad_weight, hv_weight,
                      dice_weight, crossentropy_weight, mxu_bf16=False):
    N, C, H, W = x_pred.shape
    NB = _pick_batch_block(N, H, W)           # frames per grid step
    RS = _pick_strip(H, W)                    # rows per elementwise strip
    HPADF = ((TOP + H + PAD + 7) // 8) * 8    # per-frame padded scratch height
    nsteps = N // NB

    kmat = make_grad_kernel()
    colmats_np = build_col_toeplitz_fused(W, kmat)          # (2, W, 11*W)
    colmats = jnp.asarray(colmats_np,
                          dtype=jnp.bfloat16 if mxu_bf16 else jnp.float32)
    y_i32 = y.astype(jnp.int32)

    # per-generation VMEM budget: cap from hardware, leave headroom, count the
    # resident Toeplitz constant as double-buffered.
    cbytes = 2 if mxu_bf16 else 4
    blk = 4 * NB * H * W * (C + 7)                      # per-step input blocks
    colm = cbytes * 2 * W * KSIZE * W                   # resident Toeplitz RHS
    scratch = 4 * (2 * NB * HPADF * W + NB * H * W)     # pscr + wk scratch
    mm = 4 * 2 * NB * HPADF * KSIZE * W                 # conv matmul results
    est = 2 * blk + 2 * colm + scratch + mm + (4 << 20)
    cap = _vmem_capacity_bytes()
    vmem_limit = int(max(32 << 20, min(est, cap - (8 << 20))))

    kern = _build_kernel(C, H, W, NB, HPADF, RS, float(edge_weight), mxu_bf16)

    sums = pl.pallas_call(
        kern,
        out_shape=jax.ShapeDtypeStruct((nsteps, 6), jnp.float32),
        grid=(nsteps,),
        in_specs=[
            pl.BlockSpec((NB, C, H, W), lambda n: (n, 0, 0, 0)),      # x_pred
            pl.BlockSpec((NB, H, W), lambda n: (n, 0, 0)),            # y
            pl.BlockSpec((NB, 2, H, W), lambda n: (n, 0, 0, 0)),      # hvm_pred
            pl.BlockSpec((NB, 2, H, W), lambda n: (n, 0, 0, 0)),      # hvmaps
            pl.BlockSpec((NB, H, W), lambda n: (n, 0, 0)),            # y_weight
            pl.BlockSpec((NB, H, W), lambda n: (n, 0, 0)),            # hv_weight map
            pl.BlockSpec((2, W, KSIZE * W), lambda n: (0, 0, 0)),     # Toeplitz RHS (resident)
            pl.BlockSpec(memory_space=pltpu.SMEM),                    # class_weight
        ],
        out_specs=pl.BlockSpec((1, 6), lambda n: (n, 0), memory_space=pltpu.SMEM),
        scratch_shapes=[
            pltpu.VMEM((2, NB * HPADF, W), jnp.float32),   # aligned padded diff maps
            pltpu.VMEM((NB, H, W), jnp.float32),           # staged weight map wk
        ],
        compiler_params=pltpu.CompilerParams(
            dimension_semantics=("parallel",),     # batch steps independent (v7x: 2 TCs)
            vmem_limit_bytes=vmem_limit),
    )(x_pred, y_i32, hvm_pred, hvmaps, y_weight, hv_weight_map, colmats, class_weight)

    tot = jnp.sum(sums, axis=0)
    ce_sum, hv_sum, grad_sum, inse, l, r = (tot[i] for i in range(6))

    lossCE = ce_sum / (N * H * W)
    lossHV = hv_sum / (N * 2 * H * W)
    lossGrad = grad_sum / (N * 2 * H * W)
    lossD = 1.0 - (2.0 * inse + SMOOTH) / (l + r + SMOOTH)

    return (hv_weight * lossHV, grad_weight * lossGrad,
            crossentropy_weight * lossCE, dice_weight * lossD)


def reference_forward(x_pred, hvm_pred, y, hvmaps, y_weight, hv_weight_map,
                      class_weight, edge_weight, grad_weight, hv_weight,
                      dice_weight, crossentropy_weight):
    # pure-JAX mirror of the PyTorch forward, for verification only
    N, C, H, W = x_pred.shape
    kmat = jnp.asarray(make_grad_kernel())
    logp = jax.nn.log_softmax(x_pred, axis=1)
    logp_y = jnp.take_along_axis(logp, y[:, None].astype(jnp.int32), axis=1)[:, 0]
    loss_matrix = -class_weight[y] * logp_y
    lossCE = jnp.mean(loss_matrix * edge_weight ** y_weight)

    pred = jnp.argmax(x_pred, axis=1)
    inse = jnp.sum((pred * y).astype(jnp.float32))
    l = jnp.sum(pred.astype(jnp.float32))
    r = jnp.sum(y.astype(jnp.float32))
    lossD = 1.0 - (2.0 * inse + SMOOTH) / (l + r + SMOOTH)

    weight = class_weight[y] * hv_weight_map
    keep = jnp.where((y == 0) & (pred == 1), 0.0, 1.0)
    lossHV = jnp.mean((hvm_pred - hvmaps) ** 2 * weight[:, None] * keep[:, None])

    def conv(img, ker):  # img (N,H,W), ker (11,11)
        return jax.lax.conv_general_dilated(
            img[:, None], ker[None, None], window_strides=(1, 1),
            padding=[(PAD, PAD), (PAD, PAD)],
            dimension_numbers=('NCHW', 'OIHW', 'NCHW'),
            precision=jax.lax.Precision.HIGHEST)[:, 0]

    kT = kmat.T
    grad_t = jnp.stack([conv(hvmaps[:, 0], kT), conv(hvmaps[:, 1], kmat)], axis=1)
    grad_p = jnp.stack([conv(hvm_pred[:, 0], kT), conv(hvm_pred[:, 1], kmat)], axis=1)
    lossG = jnp.mean((grad_p - grad_t) ** 2 * weight[:, None] * keep[:, None])

    return (hv_weight * lossHV, grad_weight * lossG,
            crossentropy_weight * lossCE, dice_weight * lossD)


if __name__ == "__main__":
    N, C, H, W = 2, 4, 16, 16
    key = jax.random.PRNGKey(0)
    k = jax.random.split(key, 6)
    x_pred = jax.random.normal(k[0], (N, C, H, W), jnp.float32)
    hvm_pred = jax.random.normal(k[1], (N, 2, H, W), jnp.float32)
    y = jax.random.randint(k[2], (N, H, W), 0, C, dtype=jnp.int32)
    hvmaps = jax.random.uniform(k[3], (N, 2, H, W), jnp.float32, -1.0, 1.0)
    y_weight = jax.random.uniform(k[4], (N, H, W), jnp.float32, 0.0, 1.0)
    hv_weight_map = jax.random.uniform(k[5], (N, H, W), jnp.float32, 0.5, 1.5)

    # deterministic "parameters" of the Criterion module
    class_weight = jnp.array([1.0, 2.0, 0.5, 1.5], jnp.float32)
    edge_weight, grad_w, hv_w, dice_w, ce_w = 1.1, 1.0, 2.0, 1.0, 0.5

    out = criterion_forward(x_pred, hvm_pred, y, hvmaps, y_weight, hv_weight_map,
                            class_weight, edge_weight, grad_w, hv_w, dice_w, ce_w)
    out = jax.block_until_ready(out)

    ref = reference_forward(x_pred, hvm_pred, y, hvmaps, y_weight, hv_weight_map,
                            class_weight, edge_weight, grad_w, hv_w, dice_w, ce_w)
    for a, b in zip(out, ref):
        np.testing.assert_allclose(np.asarray(a), np.asarray(b), rtol=5e-4, atol=1e-6)

    print("KERNEL_OK")
</pallas_src>

<mosaic_0001>
module attributes {stable_mosaic.version = 11 : i64} {
  func.func @kernel(%arg0: i32, %arg1: memref<2x4x16x16xf32, #tpu.memory_space<vmem>>, %arg2: memref<2x16x16xi32, #tpu.memory_space<vmem>>, %arg3: memref<2x2x16x16xf32, #tpu.memory_space<vmem>>, %arg4: memref<2x2x16x16xf32, #tpu.memory_space<vmem>>, %arg5: memref<2x16x16xf32, #tpu.memory_space<vmem>>, %arg6: memref<2x16x16xf32, #tpu.memory_space<vmem>>, %arg7: memref<2x16x176xf32, #tpu.memory_space<vmem>>, %arg8: memref<4xf32, #tpu.memory_space<smem>>, %arg9: memref<1x6xf32, #tpu.memory_space<smem>>, %arg10: memref<2x64x16xf32, #tpu.memory_space<vmem>>, %arg11: memref<2x16x16xf32, #tpu.memory_space<vmem>>) attributes {dimension_semantics = [#tpu.dimension_semantics<parallel>], iteration_bounds = array<i64: 1>, scalar_prefetch = 0 : i64, scratch_operands = 2 : i64, tpu.core_type = #tpu.core_type<tc>, window_params = [{transform_indices = @transform_0, window_bounds = array<i64: 2, 4, 16, 16>}, {transform_indices = @transform_1, window_bounds = array<i64: 2, 16, 16>}, {transform_indices = @transform_2, window_bounds = array<i64: 2, 2, 16, 16>}, {transform_indices = @transform_3, window_bounds = array<i64: 2, 2, 16, 16>}, {transform_indices = @transform_4, window_bounds = array<i64: 2, 16, 16>}, {transform_indices = @transform_5, window_bounds = array<i64: 2, 16, 16>}, {pipeline_mode = #tpu.pipeline_mode<synchronous>, transform_indices = @transform_6, window_bounds = array<i64: 2, 16, 176>}, {transform_indices = @transform_7, window_bounds = array<i64: 4>}, {transform_indices = @transform_8, window_bounds = array<i64: 1, 6>}]} {
    %c0 = arith.constant 0 : index
    %0 = memref.load %arg8[%c0] : memref<4xf32, #tpu.memory_space<smem>>
    %c1 = arith.constant 1 : index
    %1 = memref.load %arg8[%c1] : memref<4xf32, #tpu.memory_space<smem>>
    %c2 = arith.constant 2 : index
    %2 = memref.load %arg8[%c2] : memref<4xf32, #tpu.memory_space<smem>>
    %c3 = arith.constant 3 : index
    %3 = memref.load %arg8[%c3] : memref<4xf32, #tpu.memory_space<smem>>
    %cst = arith.constant 0.000000e+00 : f32
    %4 = vector.broadcast %cst : f32 to vector<8x16xf32>
    %c0_0 = arith.constant 0 : index
    %c0_1 = arith.constant 0 : index
    %c0_2 = arith.constant 0 : index
    %5 = vector.load %arg10[%c0_0, %c0_1, %c0_2] : memref<2x64x16xf32, #tpu.memory_space<vmem>>, vector<1x8x16xf32>
    %6 = vector.shape_cast %5 : vector<1x8x16xf32> to vector<8x16xf32>
    %7 = vector.shape_cast %4 : vector<8x16xf32> to vector<1x8x16xf32>
    tpu.vector_store %arg10[%c0_0, %c0_1, %c0_2], %7 {strides = array<i32>} : memref<2x64x16xf32, #tpu.memory_space<vmem>>, vector<1x8x16xf32>,
    %cst_3 = arith.constant 0.000000e+00 : f32
    %8 = vector.broadcast %cst_3 : f32 to vector<8x16xf32>
    %c1_4 = arith.constant 1 : index
    %c0_5 = arith.constant 0 : index
    %c0_6 = arith.constant 0 : index
    %9 = vector.load %arg10[%c1_4, %c0_5, %c0_6] : memref<2x64x16xf32, #tpu.memory_space<vmem>>, vector<1x8x16xf32>
    %10 = vector.shape_cast %9 : vector<1x8x16xf32> to vector<8x16xf32>
    %11 = vector.shape_cast %8 : vector<8x16xf32> to vector<1x8x16xf32>
    tpu.vector_store %arg10[%c1_4, %c0_5, %c0_6], %11 {strides = array<i32>} : memref<2x64x16xf32, #tpu.memory_space<vmem>>, vector<1x8x16xf32>,
    %cst_7 = arith.constant 0.000000e+00 : f32
    %12 = vector.broadcast %cst_7 : f32 to vector<8x16xf32>
    %c0_8 = arith.constant 0 : index
    %c24 = arith.constant 24 : index
    %c0_9 = arith.constant 0 : index
    %13 = vector.load %arg10[%c0_8, %c24, %c0_9] : memref<2x64x16xf32, #tpu.memory_space<vmem>>, vector<1x8x16xf32>
    %14 = vector.shape_cast %13 : vector<1x8x16xf32> to vector<8x16xf32>
    %15 = vector.shape_cast %12 : vector<8x16xf32> to vector<1x8x16xf32>
    tpu.vector_store %arg10[%c0_8, %c24, %c0_9], %15 {strides = array<i32>} : memref<2x64x16xf32, #tpu.memory_space<vmem>>, vector<1x8x16xf32>,
    %cst_10 = arith.constant 0.000000e+00 : f32
    %16 = vector.broadcast %cst_10 : f32 to vector<8x16xf32>
    %c1_11 = arith.constant 1 : index
    %c24_12 = arith.constant 24 : index
    %c0_13 = arith.constant 0 : index
    %17 = vector.load %arg10[%c1_11, %c24_12, %c0_13] : memref<2x64x16xf32, #tpu.memory_space<vmem>>, vector<1x8x16xf32>
    %18 = vector.shape_cast %17 : vector<1x8x16xf32> to vector<8x16xf32>
    %19 = vector.shape_cast %16 : vector<8x16xf32> to vector<1x8x16xf32>
    tpu.vector_store %arg10[%c1_11, %c24_12, %c0_13], %19 {strides = array<i32>} : memref<2x64x16xf32, #tpu.memory_space<vmem>>, vector<1x8x16xf32>,
    %c0_14 = arith.constant 0 : index
    %c0_15 = arith.constant 0 : index
    %c0_16 = arith.constant 0 : index
    %20 = vector.load %arg2[%c0_14, %c0_15, %c0_16] : memref<2x16x16xi32, #tpu.memory_space<vmem>>, vector<1x16x16xi32>
    %21 = vector.shape_cast %20 : vector<1x16x16xi32> to vector<16x16xi32>
    %c0_17 = arith.constant 0 : index
    %c0_18 = arith.constant 0 : index
    %c0_19 = arith.constant 0 : index
    %22 = vector.load %arg5[%c0_17, %c0_18, %c0_19] : memref<2x16x16xf32, #tpu.memory_space<vmem>>, vector<1x16x16xf32>
    %23 = vector.shape_cast %22 : vector<1x16x16xf32> to vector<16x16xf32>
    %c0_20 = arith.constant 0 : index
    %c0_21 = arith.constant 0 : index
    %c0_22 = arith.constant 0 : index
    %24 = vector.load %arg6[%c0_20, %c0_21, %c0_22] : memref<2x16x16xf32, #tpu.memory_space<vmem>>, vector<1x16x16xf32>
    %25 = vector.shape_cast %24 : vector<1x16x16xf32> to vector<16x16xf32>
    %c0_23 = arith.constant 0 : index
    %c0_24 = arith.constant 0 : index
    %c0_25 = arith.constant 0 : index
    %c0_26 = arith.constant 0 : index
    %26 = vector.load %arg1[%c0_23, %c0_24, %c0_25, %c0_26] : memref<2x4x16x16xf32, #tpu.memory_space<vmem>>, vector<1x1x16x16xf32>
    %27 = vector.shape_cast %26 : vector<1x1x16x16xf32> to vector<16x16xf32>
    %c0_27 = arith.constant 0 : index
    %c1_28 = arith.constant 1 : index
    %c0_29 = arith.constant 0 : index
    %c0_30 = arith.constant 0 : index
    %28 = vector.load %arg1[%c0_27, %c1_28, %c0_29, %c0_30] : memref<2x4x16x16xf32, #tpu.memory_space<vmem>>, vector<1x1x16x16xf32>
    %29 = vector.shape_cast %28 : vector<1x1x16x16xf32> to vector<16x16xf32>
    %c0_31 = arith.constant 0 : index
    %c2_32 = arith.constant 2 : index
    %c0_33 = arith.constant 0 : index
    %c0_34 = arith.constant 0 : index
    %30 = vector.load %arg1[%c0_31, %c2_32, %c0_33, %c0_34] : memref<2x4x16x16xf32, #tpu.memory_space<vmem>>, vector<1x1x16x16xf32>
    %31 = vector.shape_cast %30 : vector<1x1x16x16xf32> to vector<16x16xf32>
    %c0_35 = arith.constant 0 : index
    %c3_36 = arith.constant 3 : index
    %c0_37 = arith.constant 0 : index
    %c0_38 = arith.constant 0 : index
    %32 = vector.load %arg1[%c0_35, %c3_36, %c0_37, %c0_38] : memref<2x4x16x16xf32, #tpu.memory_space<vmem>>, vector<1x1x16x16xf32>
    %33 = vector.shape_cast %32 : vector<1x1x16x16xf32> to vector<16x16xf32>
    %c0_i32 = arith.constant 0 : i32
    %34 = vector.broadcast %c0_i32 : i32 to vector<16x16xi32>
    %35 = arith.cmpf ogt, %29, %27 : vector<16x16xf32>
    %c1_i32 = arith.constant 1 : i32
    %36 = vector.broadcast %c1_i32 : i32 to vector<16x16xi32>
    %37 = arith.select %35, %36, %34 : vector<16x16xi1>, vector<16x16xi32>
    %38 = arith.select %35, %29, %27 : vector<16x16xi1>, vector<16x16xf32>
    %39 = arith.cmpf ogt, %31, %38 : vector<16x16xf32>
    %c2_i32 = arith.constant 2 : i32
    %40 = vector.broadcast %c2_i32 : i32 to vector<16x16xi32>
    %41 = arith.select %39, %40, %37 : vector<16x16xi1>, vector<16x16xi32>
    %42 = arith.select %39, %31, %38 : vector<16x16xi1>, vector<16x16xf32>
    %43 = arith.cmpf ogt, %33, %42 : vector<16x16xf32>
    %c3_i32 = arith.constant 3 : i32
    %44 = vector.broadcast %c3_i32 : i32 to vector<16x16xi32>
    %45 = arith.select %43, %44, %41 : vector<16x16xi1>, vector<16x16xi32>
    %46 = arith.select %43, %33, %42 : vector<16x16xi1>, vector<16x16xf32>
    %cst_39 = arith.constant 0.000000e+00 : f32
    %47 = vector.broadcast %cst_39 : f32 to vector<16x16xf32>
    %48 = arith.subf %27, %46 : vector<16x16xf32>
    %49 = math.exp %48 : vector<16x16xf32>
    %50 = arith.addf %47, %49 : vector<16x16xf32>
    %51 = arith.subf %29, %46 : vector<16x16xf32>
    %52 = math.exp %51 : vector<16x16xf32>
    %53 = arith.addf %50, %52 : vector<16x16xf32>
    %54 = arith.subf %31, %46 : vector<16x16xf32>
    %55 = math.exp %54 : vector<16x16xf32>
    %56 = arith.addf %53, %55 : vector<16x16xf32>
    %57 = arith.subf %33, %46 : vector<16x16xf32>
    %58 = math.exp %57 : vector<16x16xf32>
    %59 = arith.addf %56, %58 : vector<16x16xf32>
    %60 = math.log %59 : vector<16x16xf32>
    %61 = arith.addf %46, %60 : vector<16x16xf32>
    %cst_40 = arith.constant 0.000000e+00 : f32
    %62 = vector.broadcast %cst_40 : f32 to vector<16x16xf32>
    %cst_41 = arith.constant 0.000000e+00 : f32
    %63 = vector.broadcast %cst_41 : f32 to vector<16x16xf32>
    %c0_i32_42 = arith.constant 0 : i32
    %64 = vector.broadcast %c0_i32_42 : i32 to vector<16x16xi32>
    %65 = arith.cmpi eq, %21, %64 : vector<16x16xi32>
    %66 = arith.extui %65 : vector<16x16xi1> to vector<16x16xi32>
    %67 = arith.sitofp %66 : vector<16x16xi32> to vector<16x16xf32>
    %68 = arith.subf %27, %61 : vector<16x16xf32>
    %69 = arith.mulf %67, %68 : vector<16x16xf32>
    %70 = arith.addf %62, %69 : vector<16x16xf32>
    %71 = vector.broadcast %0 : f32 to vector<16x16xf32>
    %72 = arith.mulf %67, %71 : vector<16x16xf32>
    %73 = arith.addf %63, %72 : vector<16x16xf32>
    %c1_i32_43 = arith.constant 1 : i32
    %74 = vector.broadcast %c1_i32_43 : i32 to vector<16x16xi32>
    %75 = arith.cmpi eq, %21, %74 : vector<16x16xi32>
    %76 = arith.extui %75 : vector<16x16xi1> to vector<16x16xi32>
    %77 = arith.sitofp %76 : vector<16x16xi32> to vector<16x16xf32>
    %78 = arith.subf %29, %61 : vector<16x16xf32>
    %79 = arith.mulf %77, %78 : vector<16x16xf32>
    %80 = arith.addf %70, %79 : vector<16x16xf32>
    %81 = vector.broadcast %1 : f32 to vector<16x16xf32>
    %82 = arith.mulf %77, %81 : vector<16x16xf32>
    %83 = arith.addf %73, %82 : vector<16x16xf32>
    %c2_i32_44 = arith.constant 2 : i32
    %84 = vector.broadcast %c2_i32_44 : i32 to vector<16x16xi32>
    %85 = arith.cmpi eq, %21, %84 : vector<16x16xi32>
    %86 = arith.extui %85 : vector<16x16xi1> to vector<16x16xi32>
    %87 = arith.sitofp %86 : vector<16x16xi32> to vector<16x16xf32>
    %88 = arith.subf %31, %61 : vector<16x16xf32>
    %89 = arith.mulf %87, %88 : vector<16x16xf32>
    %90 = arith.addf %80, %89 : vector<16x16xf32>
    %91 = vector.broadcast %2 : f32 to vector<16x16xf32>
    %92 = arith.mulf %87, %91 : vector<16x16xf32>
    %93 = arith.addf %83, %92 : vector<16x16xf32>
    %c3_i32_45 = arith.constant 3 : i32
    %94 = vector.broadcast %c3_i32_45 : i32 to vector<16x16xi32>
    %95 = arith.cmpi eq, %21, %94 : vector<16x16xi32>
    %96 = arith.extui %95 : vector<16x16xi1> to vector<16x16xi32>
    %97 = arith.sitofp %96 : vector<16x16xi32> to vector<16x16xf32>
    %98 = arith.subf %33, %61 : vector<16x16xf32>
    %99 = arith.mulf %97, %98 : vector<16x16xf32>
    %100 = arith.addf %90, %99 : vector<16x16xf32>
    %101 = vector.broadcast %3 : f32 to vector<16x16xf32>
    %102 = arith.mulf %97, %101 : vector<16x16xf32>
    %103 = arith.addf %93, %102 : vector<16x16xf32>
    %cst_46 = arith.constant 0.000000e+00 : f32
    %104 = vector.broadcast %cst_46 : f32 to vector<16x16xf32>
    %105 = arith.subf %104, %103 : vector<16x16xf32>
    %106 = arith.mulf %105, %100 : vector<16x16xf32>
    %cst_47 = arith.constant 0.0953101813 : f32
    %107 = vector.broadcast %cst_47 : f32 to vector<16x16xf32>
    %108 = arith.mulf %23, %107 : vector<16x16xf32>
    %109 = math.exp %108 : vector<16x16xf32>
    %110 = arith.mulf %106, %109 : vector<16x16xf32>
    %c0_i32_48 = arith.constant 0 : i32
    %111 = vector.broadcast %c0_i32_48 : i32 to vector<16x16xi32>
    %112 = arith.cmpi eq, %21, %111 : vector<16x16xi32>
    %c1_i32_49 = arith.constant 1 : i32
    %113 = vector.broadcast %c1_i32_49 : i32 to vector<16x16xi32>
    %114 = arith.cmpi eq, %45, %113 : vector<16x16xi32>
    %115 = arith.andi %112, %114 : vector<16x16xi1>
    %cst_50 = arith.constant 0.000000e+00 : f32
    %cst_51 = arith.constant 1.000000e+00 : f32
    %116 = vector.broadcast %cst_50 : f32 to vector<16x16xf32>
    %117 = vector.broadcast %cst_51 : f32 to vector<16x16xf32>
    %118 = arith.select %115, %116, %117 : vector<16x16xi1>, vector<16x16xf32>
    %119 = arith.mulf %103, %25 : vector<16x16xf32>
    %120 = arith.mulf %119, %118 : vector<16x16xf32>
    %c0_52 = arith.constant 0 : index
    %c0_53 = arith.constant 0 : index
    %c0_54 = arith.constant 0 : index
    %121 = vector.load %arg11[%c0_52, %c0_53, %c0_54] : memref<2x16x16xf32, #tpu.memory_space<vmem>>, vector<1x16x16xf32>
    %122 = vector.shape_cast %121 : vector<1x16x16xf32> to vector<16x16xf32>
    %123 = vector.shape_cast %120 : vector<16x16xf32> to vector<1x16x16xf32>
    tpu.vector_store %arg11[%c0_52, %c0_53, %c0_54], %123 {strides = array<i32>} : memref<2x16x16xf32, #tpu.memory_space<vmem>>, vector<1x16x16xf32>,
    %c0_55 = arith.constant 0 : index
    %c0_56 = arith.constant 0 : index
    %c0_57 = arith.constant 0 : index
    %c0_58 = arith.constant 0 : index
    %124 = vector.load %arg3[%c0_55, %c0_56, %c0_57, %c0_58] : memref<2x2x16x16xf32, #tpu.memory_space<vmem>>, vector<1x1x16x16xf32>
    %125 = vector.shape_cast %124 : vector<1x1x16x16xf32> to vector<16x16xf32>
    %c0_59 = arith.constant 0 : index
    %c0_60 = arith.constant 0 : index
    %c0_61 = arith.constant 0 : index
    %c0_62 = arith.constant 0 : index
    %126 = vector.load %arg4[%c0_59, %c0_60, %c0_61, %c0_62] : memref<2x2x16x16xf32, #tpu.memory_space<vmem>>, vector<1x1x16x16xf32>
    %127 = vector.shape_cast %126 : vector<1x1x16x16xf32> to vector<16x16xf32>
    %128 = arith.subf %125, %127 : vector<16x16xf32>
    %c0_63 = arith.constant 0 : index
    %c1_64 = arith.constant 1 : index
    %c0_65 = arith.constant 0 : index
    %c0_66 = arith.constant 0 : index
    %129 = vector.load %arg3[%c0_63, %c1_64, %c0_65, %c0_66] : memref<2x2x16x16xf32, #tpu.memory_space<vmem>>, vector<1x1x16x16xf32>
    %130 = vector.shape_cast %129 : vector<1x1x16x16xf32> to vector<16x16xf32>
    %c0_67 = arith.constant 0 : index
    %c1_68 = arith.constant 1 : index
    %c0_69 = arith.constant 0 : index
    %c0_70 = arith.constant 0 : index
    %131 = vector.load %arg4[%c0_67, %c1_68, %c0_69, %c0_70] : memref<2x2x16x16xf32, #tpu.memory_space<vmem>>, vector<1x1x16x16xf32>
    %132 = vector.shape_cast %131 : vector<1x1x16x16xf32> to vector<16x16xf32>
    %133 = arith.subf %130, %132 : vector<16x16xf32>
    %c0_71 = arith.constant 0 : index
    %c8 = arith.constant 8 : index
    %c0_72 = arith.constant 0 : index
    %134 = vector.load %arg10[%c0_71, %c8, %c0_72] : memref<2x64x16xf32, #tpu.memory_space<vmem>>, vector<1x16x16xf32>
    %135 = vector.shape_cast %134 : vector<1x16x16xf32> to vector<16x16xf32>
    %136 = vector.shape_cast %128 : vector<16x16xf32> to vector<1x16x16xf32>
    tpu.vector_store %arg10[%c0_71, %c8, %c0_72], %136 {strides = array<i32>} : memref<2x64x16xf32, #tpu.memory_space<vmem>>, vector<1x16x16xf32>,
    %c1_73 = arith.constant 1 : index
    %c8_74 = arith.constant 8 : index
    %c0_75 = arith.constant 0 : index
    %137 = vector.load %arg10[%c1_73, %c8_74, %c0_75] : memref<2x64x16xf32, #tpu.memory_space<vmem>>, vector<1x16x16xf32>
    %138 = vector.shape_cast %137 : vector<1x16x16xf32> to vector<16x16xf32>
    %139 = vector.shape_cast %133 : vector<16x16xf32> to vector<1x16x16xf32>
    tpu.vector_store %arg10[%c1_73, %c8_74, %c0_75], %139 {strides = array<i32>} : memref<2x64x16xf32, #tpu.memory_space<vmem>>, vector<1x16x16xf32>,
    %140 = arith.sitofp %45 : vector<16x16xi32> to vector<16x16xf32>
    %141 = arith.sitofp %21 : vector<16x16xi32> to vector<16x16xf32>
    %142 = vector.shape_cast %110 : vector<16x16xf32> to vector<1x16x16xf32>
    %cst_76 = arith.constant dense<0.000000e+00> : vector<1xf32>
    %143 = vector.multi_reduction <add>, %142, %cst_76 [1, 2] : vector<1x16x16xf32> to vector<1xf32>
    %144 = vector.shape_cast %143 : vector<1xf32> to vector<1x1x1xf32>
    %145 = vector.extract %144[0, 0, 0] : f32 from vector<1x1x1xf32>
    %cst_77 = arith.constant 0.000000e+00 : f32
    %146 = arith.addf %cst_77, %145 : f32
    %147 = arith.mulf %128, %128 : vector<16x16xf32>
    %148 = arith.mulf %133, %133 : vector<16x16xf32>
    %149 = arith.addf %147, %148 : vector<16x16xf32>
    %150 = arith.mulf %149, %120 : vector<16x16xf32>
    %151 = vector.shape_cast %150 : vector<16x16xf32> to vector<1x16x16xf32>
    %cst_78 = arith.constant dense<0.000000e+00> : vector<1xf32>
    %152 = vector.multi_reduction <add>, %151, %cst_78 [1, 2] : vector<1x16x16xf32> to vector<1xf32>
    %153 = vector.shape_cast %152 : vector<1xf32> to vector<1x1x1xf32>
    %154 = vector.extract %153[0, 0, 0] : f32 from vector<1x1x1xf32>
    %cst_79 = arith.constant 0.000000e+00 : f32
    %155 = arith.addf %cst_79, %154 : f32
    %156 = arith.mulf %140, %141 : vector<16x16xf32>
    %157 = vector.shape_cast %156 : vector<16x16xf32> to vector<1x16x16xf32>
    %cst_80 = arith.constant dense<0.000000e+00> : vector<1xf32>
    %158 = vector.multi_reduction <add>, %157, %cst_80 [1, 2] : vector<1x16x16xf32> to vector<1xf32>
    %159 = vector.shape_cast %158 : vector<1xf32> to vector<1x1x1xf32>
    %160 = vector.extract %159[0, 0, 0] : f32 from vector<1x1x1xf32>
    %cst_81 = arith.constant 0.000000e+00 : f32
    %161 = arith.addf %cst_81, %160 : f32
    %162 = vector.shape_cast %140 : vector<16x16xf32> to vector<1x16x16xf32>
    %cst_82 = arith.constant dense<0.000000e+00> : vector<1xf32>
    %163 = vector.multi_reduction <add>, %162, %cst_82 [1, 2] : vector<1x16x16xf32> to vector<1xf32>
    %164 = vector.shape_cast %163 : vector<1xf32> to vector<1x1x1xf32>
    %165 = vector.extract %164[0, 0, 0] : f32 from vector<1x1x1xf32>
    %cst_83 = arith.constant 0.000000e+00 : f32
    %166 = arith.addf %cst_83, %165 : f32
    %167 = vector.shape_cast %141 : vector<16x16xf32> to vector<1x16x16xf32>
    %cst_84 = arith.constant dense<0.000000e+00> : vector<1xf32>
    %168 = vector.multi_reduction <add>, %167, %cst_84 [1, 2] : vector<1x16x16xf32> to vector<1xf32>
    %169 = vector.shape_cast %168 : vector<1xf32> to vector<1x1x1xf32>
    %170 = vector.extract %169[0, 0, 0] : f32 from vector<1x1x1xf32>
    %cst_85 = arith.constant 0.000000e+00 : f32
    %171 = arith.addf %cst_85, %170 : f32
    %cst_86 = arith.constant 0.000000e+00 : f32
    %172 = vector.broadcast %cst_86 : f32 to vector<8x16xf32>
    %c0_87 = arith.constant 0 : index
    %c32 = arith.constant 32 : index
    %c0_88 = arith.constant 0 : index
    %173 = vector.load %arg10[%c0_87, %c32, %c0_88] : memref<2x64x16xf32, #tpu.memory_space<vmem>>, vector<1x8x16xf32>
    %174 = vector.shape_cast %173 : vector<1x8x16xf32> to vector<8x16xf32>
    %175 = vector.shape_cast %172 : vector<8x16xf32> to vector<1x8x16xf32>
    tpu.vector_store %arg10[%c0_87, %c32, %c0_88], %175 {strides = array<i32>} : memref<2x64x16xf32, #tpu.memory_space<vmem>>, vector<1x8x16xf32>,
    %cst_89 = arith.constant 0.000000e+00 : f32
    %176 = vector.broadcast %cst_89 : f32 to vector<8x16xf32>
    %c1_90 = arith.constant 1 : index
    %c32_91 = arith.constant 32 : index
    %c0_92 = arith.constant 0 : index
    %177 = vector.load %arg10[%c1_90, %c32_91, %c0_92] : memref<2x64x16xf32, #tpu.memory_space<vmem>>, vector<1x8x16xf32>
    %178 = vector.shape_cast %177 : vector<1x8x16xf32> to vector<8x16xf32>
    %179 = vector.shape_cast %176 : vector<8x16xf32> to vector<1x8x16xf32>
    tpu.vector_store %arg10[%c1_90, %c32_91, %c0_92], %179 {strides = array<i32>} : memref<2x64x16xf32, #tpu.memory_space<vmem>>, vector<1x8x16xf32>,
    %cst_93 = arith.constant 0.000000e+00 : f32
    %180 = vector.broadcast %cst_93 : f32 to vector<8x16xf32>
    %c0_94 = arith.constant 0 : index
    %c56 = arith.constant 56 : index
    %c0_95 = arith.constant 0 : index
    %181 = vector.load %arg10[%c0_94, %c56, %c0_95] : memref<2x64x16xf32, #tpu.memory_space<vmem>>, vector<1x8x16xf32>
    %182 = vector.shape_cast %181 : vector<1x8x16xf32> to vector<8x16xf32>
    %183 = vector.shape_cast %180 : vector<8x16xf32> to vector<1x8x16xf32>
    tpu.vector_store %arg10[%c0_94, %c56, %c0_95], %183 {strides = array<i32>} : memref<2x64x16xf32, #tpu.memory_space<vmem>>, vector<1x8x16xf32>,
    %cst_96 = arith.constant 0.000000e+00 : f32
    %184 = vector.broadcast %cst_96 : f32 to vector<8x16xf32>
    %c1_97 = arith.constant 1 : index
    %c56_98 = arith.constant 56 : index
    %c0_99 = arith.constant 0 : index
    %185 = vector.load %arg10[%c1_97, %c56_98, %c0_99] : memref<2x64x16xf32, #tpu.memory_space<vmem>>, vector<1x8x16xf32>
    %186 = vector.shape_cast %185 : vector<1x8x16xf32> to vector<8x16xf32>
    %187 = vector.shape_cast %184 : vector<8x16xf32> to vector<1x8x16xf32>
    tpu.vector_store %arg10[%c1_97, %c56_98, %c0_99], %187 {strides = array<i32>} : memref<2x64x16xf32, #tpu.memory_space<vmem>>, vector<1x8x16xf32>,
    %c1_100 = arith.constant 1 : index
    %c0_101 = arith.constant 0 : index
    %c0_102 = arith.constant 0 : index
    %188 = vector.load %arg2[%c1_100, %c0_101, %c0_102] : memref<2x16x16xi32, #tpu.memory_space<vmem>>, vector<1x16x16xi32>
    %189 = vector.shape_cast %188 : vector<1x16x16xi32> to vector<16x16xi32>
    %c1_103 = arith.constant 1 : index
    %c0_104 = arith.constant 0 : index
    %c0_105 = arith.constant 0 : index
    %190 = vector.load %arg5[%c1_103, %c0_104, %c0_105] : memref<2x16x16xf32, #tpu.memory_space<vmem>>, vector<1x16x16xf32>
    %191 = vector.shape_cast %190 : vector<1x16x16xf32> to vector<16x16xf32>
    %c1_106 = arith.constant 1 : index
    %c0_107 = arith.constant 0 : index
    %c0_108 = arith.constant 0 : index
    %192 = vector.load %arg6[%c1_106, %c0_107, %c0_108] : memref<2x16x16xf32, #tpu.memory_space<vmem>>, vector<1x16x16xf32>
    %193 = vector.shape_cast %192 : vector<1x16x16xf32> to vector<16x16xf32>
    %c1_109 = arith.constant 1 : index
    %c0_110 = arith.constant 0 : index
    %c0_111 = arith.constant 0 : index
    %c0_112 = arith.constant 0 : index
    %194 = vector.load %arg1[%c1_109, %c0_110, %c0_111, %c0_112] : memref<2x4x16x16xf32, #tpu.memory_space<vmem>>, vector<1x1x16x16xf32>
    %195 = vector.shape_cast %194 : vector<1x1x16x16xf32> to vector<16x16xf32>
    %c1_113 = arith.constant 1 : index
    %c1_114 = arith.constant 1 : index
    %c0_115 = arith.constant 0 : index
    %c0_116 = arith.constant 0 : index
    %196 = vector.load %arg1[%c1_113, %c1_114, %c0_115, %c0_116] : memref<2x4x16x16xf32, #tpu.memory_space<vmem>>, vector<1x1x16x16xf32>
    %197 = vector.shape_cast %196 : vector<1x1x16x16xf32> to vector<16x16xf32>
    %c1_117 = arith.constant 1 : index
    %c2_118 = arith.constant 2 : index
    %c0_119 = arith.constant 0 : index
    %c0_120 = arith.constant 0 : index
    %198 = vector.load %arg1[%c1_117, %c2_118, %c0_119, %c0_120] : memref<2x4x16x16xf32, #tpu.memory_space<vmem>>, vector<1x1x16x16xf32>
    %199 = vector.shape_cast %198 : vector<1x1x16x16xf32> to vector<16x16xf32>
    %c1_121 = arith.constant 1 : index
    %c3_122 = arith.constant 3 : index
    %c0_123 = arith.constant 0 : index
    %c0_124 = arith.constant 0 : index
    %200 = vector.load %arg1[%c1_121, %c3_122, %c0_123, %c0_124] : memref<2x4x16x16xf32, #tpu.memory_space<vmem>>, vector<1x1x16x16xf32>
    %201 = vector.shape_cast %200 : vector<1x1x16x16xf32> to vector<16x16xf32>
    %c0_i32_125 = arith.constant 0 : i32
    %202 = vector.broadcast %c0_i32_125 : i32 to vector<16x16xi32>
    %203 = arith.cmpf ogt, %197, %195 : vector<16x16xf32>
    %c1_i32_126 = arith.constant 1 : i32
    %204 = vector.broadcast %c1_i32_126 : i32 to vector<16x16xi32>
    %205 = arith.select %203, %204, %202 : vector<16x16xi1>, vector<16x16xi32>
    %206 = arith.select %203, %197, %195 : vector<16x16xi1>, vector<16x16xf32>
    %207 = arith.cmpf ogt, %199, %206 : vector<16x16xf32>
    %c2_i32_127 = arith.constant 2 : i32
    %208 = vector.broadcast %c2_i32_127 : i32 to vector<16x16xi32>
    %209 = arith.select %207, %208, %205 : vector<16x16xi1>, vector<16x16xi32>
    %210 = arith.select %207, %199, %206 : vector<16x16xi1>, vector<16x16xf32>
    %211 = arith.cmpf ogt, %201, %210 : vector<16x16xf32>
    %c3_i32_128 = arith.constant 3 : i32
    %212 = vector.broadcast %c3_i32_128 : i32 to vector<16x16xi32>
    %213 = arith.select %211, %212, %209 : vector<16x16xi1>, vector<16x16xi32>
    %214 = arith.select %211, %201, %210 : vector<16x16xi1>, vector<16x16xf32>
    %cst_129 = arith.constant 0.000000e+00 : f32
    %215 = vector.broadcast %cst_129 : f32 to vector<16x16xf32>
    %216 = arith.subf %195, %214 : vector<16x16xf32>
    %217 = math.exp %216 : vector<16x16xf32>
    %218 = arith.addf %215, %217 : vector<16x16xf32>
    %219 = arith.subf %197, %214 : vector<16x16xf32>
    %220 = math.exp %219 : vector<16x16xf32>
    %221 = arith.addf %218, %220 : vector<16x16xf32>
    %222 = arith.subf %199, %214 : vector<16x16xf32>
    %223 = math.exp %222 : vector<16x16xf32>
    %224 = arith.addf %221, %223 : vector<16x16xf32>
    %225 = arith.subf %201, %214 : vector<16x16xf32>
    %226 = math.exp %225 : vector<16x16xf32>
    %227 = arith.addf %224, %226 : vector<16x16xf32>
    %228 = math.log %227 : vector<16x16xf32>
    %229 = arith.addf %214, %228 : vector<16x16xf32>
    %cst_130 = arith.constant 0.000000e+00 : f32
    %230 = vector.broadcast %cst_130 : f32 to vector<16x16xf32>
    %cst_131 = arith.constant 0.000000e+00 : f32
    %231 = vector.broadcast %cst_131 : f32 to vector<16x16xf32>
    %c0_i32_132 = arith.constant 0 : i32
    %232 = vector.broadcast %c0_i32_132 : i32 to vector<16x16xi32>
    %233 = arith.cmpi eq, %189, %232 : vector<16x16xi32>
    %234 = arith.extui %233 : vector<16x16xi1> to vector<16x16xi32>
    %235 = arith.sitofp %234 : vector<16x16xi32> to vector<16x16xf32>
    %236 = arith.subf %195, %229 : vector<16x16xf32>
    %237 = arith.mulf %235, %236 : vector<16x16xf32>
    %238 = arith.addf %230, %237 : vector<16x16xf32>
    %239 = vector.broadcast %0 : f32 to vector<16x16xf32>
    %240 = arith.mulf %235, %239 : vector<16x16xf32>
    %241 = arith.addf %231, %240 : vector<16x16xf32>
    %c1_i32_133 = arith.constant 1 : i32
    %242 = vector.broadcast %c1_i32_133 : i32 to vector<16x16xi32>
    %243 = arith.cmpi eq, %189, %242 : vector<16x16xi32>
    %244 = arith.extui %243 : vector<16x16xi1> to vector<16x16xi32>
    %245 = arith.sitofp %244 : vector<16x16xi32> to vector<16x16xf32>
    %246 = arith.subf %197, %229 : vector<16x16xf32>
    %247 = arith.mulf %245, %246 : vector<16x16xf32>
    %248 = arith.addf %238, %247 : vector<16x16xf32>
    %249 = vector.broadcast %1 : f32 to vector<16x16xf32>
    %250 = arith.mulf %245, %249 : vector<16x16xf32>
    %251 = arith.addf %241, %250 : vector<16x16xf32>
    %c2_i32_134 = arith.constant 2 : i32
    %252 = vector.broadcast %c2_i32_134 : i32 to vector<16x16xi32>
    %253 = arith.cmpi eq, %189, %252 : vector<16x16xi32>
    %254 = arith.extui %253 : vector<16x16xi1> to vector<16x16xi32>
    %255 = arith.sitofp %254 : vector<16x16xi32> to vector<16x16xf32>
    %256 = arith.subf %199, %229 : vector<16x16xf32>
    %257 = arith.mulf %255, %256 : vector<16x16xf32>
    %258 = arith.addf %248, %257 : vector<16x16xf32>
    %259 = vector.broadcast %2 : f32 to vector<16x16xf32>
    %260 = arith.mulf %255, %259 : vector<16x16xf32>
    %261 = arith.addf %251, %260 : vector<16x16xf32>
    %c3_i32_135 = arith.constant 3 : i32
    %262 = vector.broadcast %c3_i32_135 : i32 to vector<16x16xi32>
    %263 = arith.cmpi eq, %189, %262 : vector<16x16xi32>
    %264 = arith.extui %263 : vector<16x16xi1> to vector<16x16xi32>
    %265 = arith.sitofp %264 : vector<16x16xi32> to vector<16x16xf32>
    %266 = arith.subf %201, %229 : vector<16x16xf32>
    %267 = arith.mulf %265, %266 : vector<16x16xf32>
    %268 = arith.addf %258, %267 : vector<16x16xf32>
    %269 = vector.broadcast %3 : f32 to vector<16x16xf32>
    %270 = arith.mulf %265, %269 : vector<16x16xf32>
    %271 = arith.addf %261, %270 : vector<16x16xf32>
    %cst_136 = arith.constant 0.000000e+00 : f32
    %272 = vector.broadcast %cst_136 : f32 to vector<16x16xf32>
    %273 = arith.subf %272, %271 : vector<16x16xf32>
    %274 = arith.mulf %273, %268 : vector<16x16xf32>
    %cst_137 = arith.constant 0.0953101813 : f32
    %275 = vector.broadcast %cst_137 : f32 to vector<16x16xf32>
    %276 = arith.mulf %191, %275 : vector<16x16xf32>
    %277 = math.exp %276 : vector<16x16xf32>
    %278 = arith.mulf %274, %277 : vector<16x16xf32>
    %c0_i32_138 = arith.constant 0 : i32
    %279 = vector.broadcast %c0_i32_138 : i32 to vector<16x16xi32>
    %280 = arith.cmpi eq, %189, %279 : vector<16x16xi32>
    %c1_i32_139 = arith.constant 1 : i32
    %281 = vector.broadcast %c1_i32_139 : i32 to vector<16x16xi32>
    %282 = arith.cmpi eq, %213, %281 : vector<16x16xi32>
    %283 = arith.andi %280, %282 : vector<16x16xi1>
    %cst_140 = arith.constant 0.000000e+00 : f32
    %cst_141 = arith.constant 1.000000e+00 : f32
    %284 = vector.broadcast %cst_140 : f32 to vector<16x16xf32>
    %285 = vector.broadcast %cst_141 : f32 to vector<16x16xf32>
    %286 = arith.select %283, %284, %285 : vector<16x16xi1>, vector<16x16xf32>
    %287 = arith.mulf %271, %193 : vector<16x16xf32>
    %288 = arith.mulf %287, %286 : vector<16x16xf32>
    %c1_142 = arith.constant 1 : index
    %c0_143 = arith.constant 0 : index
    %c0_144 = arith.constant 0 : index
    %289 = vector.load %arg11[%c1_142, %c0_143, %c0_144] : memref<2x16x16xf32, #tpu.memory_space<vmem>>, vector<1x16x16xf32>
    %290 = vector.shape_cast %289 : vector<1x16x16xf32> to vector<16x16xf32>
    %291 = vector.shape_cast %288 : vector<16x16xf32> to vector<1x16x16xf32>
    tpu.vector_store %arg11[%c1_142, %c0_143, %c0_144], %291 {strides = array<i32>} : memref<2x16x16xf32, #tpu.memory_space<vmem>>, vector<1x16x16xf32>,
    %c1_145 = arith.constant 1 : index
    %c0_146 = arith.constant 0 : index
    %c0_147 = arith.constant 0 : index
    %c0_148 = arith.constant 0 : index
    %292 = vector.load %arg3[%c1_145, %c0_146, %c0_147, %c0_148] : memref<2x2x16x16xf32, #tpu.memory_space<vmem>>, vector<1x1x16x16xf32>
    %293 = vector.shape_cast %292 : vector<1x1x16x16xf32> to vector<16x16xf32>
    %c1_149 = arith.constant 1 : index
    %c0_150 = arith.constant 0 : index
    %c0_151 = arith.constant 0 : index
    %c0_152 = arith.constant 0 : index
    %294 = vector.load %arg4[%c1_149, %c0_150, %c0_151, %c0_152] : memref<2x2x16x16xf32, #tpu.memory_space<vmem>>, vector<1x1x16x16xf32>
    %295 = vector.shape_cast %294 : vector<1x1x16x16xf32> to vector<16x16xf32>
    %296 = arith.subf %293, %295 : vector<16x16xf32>
    %c1_153 = arith.constant 1 : index
    %c1_154 = arith.constant 1 : index
    %c0_155 = arith.constant 0 : index
    %c0_156 = arith.constant 0 : index
    %297 = vector.load %arg3[%c1_153, %c1_154, %c0_155, %c0_156] : memref<2x2x16x16xf32, #tpu.memory_space<vmem>>, vector<1x1x16x16xf32>
    %298 = vector.shape_cast %297 : vector<1x1x16x16xf32> to vector<16x16xf32>
    %c1_157 = arith.constant 1 : index
    %c1_158 = arith.constant 1 : index
    %c0_159 = arith.constant 0 : index
    %c0_160 = arith.constant 0 : index
    %299 = vector.load %arg4[%c1_157, %c1_158, %c0_159, %c0_160] : memref<2x2x16x16xf32, #tpu.memory_space<vmem>>, vector<1x1x16x16xf32>
    %300 = vector.shape_cast %299 : vector<1x1x16x16xf32> to vector<16x16xf32>
    %301 = arith.subf %298, %300 : vector<16x16xf32>
    %c0_161 = arith.constant 0 : index
    %c40 = arith.constant 40 : index
    %c0_162 = arith.constant 0 : index
    %302 = vector.load %arg10[%c0_161, %c40, %c0_162] : memref<2x64x16xf32, #tpu.memory_space<vmem>>, vector<1x16x16xf32>
    %303 = vector.shape_cast %302 : vector<1x16x16xf32> to vector<16x16xf32>
    %304 = vector.shape_cast %296 : vector<16x16xf32> to vector<1x16x16xf32>
    tpu.vector_store %arg10[%c0_161, %c40, %c0_162], %304 {strides = array<i32>} : memref<2x64x16xf32, #tpu.memory_space<vmem>>, vector<1x16x16xf32>,
    %c1_163 = arith.constant 1 : index
    %c40_164 = arith.constant 40 : index
    %c0_165 = arith.constant 0 : index
    %305 = vector.load %arg10[%c1_163, %c40_164, %c0_165] : memref<2x64x16xf32, #tpu.memory_space<vmem>>, vector<1x16x16xf32>
    %306 = vector.shape_cast %305 : vector<1x16x16xf32> to vector<16x16xf32>
    %307 = vector.shape_cast %301 : vector<16x16xf32> to vector<1x16x16xf32>
    tpu.vector_store %arg10[%c1_163, %c40_164, %c0_165], %307 {strides = array<i32>} : memref<2x64x16xf32, #tpu.memory_space<vmem>>, vector<1x16x16xf32>,
    %308 = arith.sitofp %213 : vector<16x16xi32> to vector<16x16xf32>
    %309 = arith.sitofp %189 : vector<16x16xi32> to vector<16x16xf32>
    %310 = vector.shape_cast %278 : vector<16x16xf32> to vector<1x16x16xf32>
    %cst_166 = arith.constant dense<0.000000e+00> : vector<1xf32>
    %311 = vector.multi_reduction <add>, %310, %cst_166 [1, 2] : vector<1x16x16xf32> to vector<1xf32>
    %312 = vector.shape_cast %311 : vector<1xf32> to vector<1x1x1xf32>
    %313 = vector.extract %312[0, 0, 0] : f32 from vector<1x1x1xf32>
    %314 = arith.addf %146, %313 : f32
    %315 = arith.mulf %296, %296 : vector<16x16xf32>
    %316 = arith.mulf %301, %301 : vector<16x16xf32>
    %317 = arith.addf %315, %316 : vector<16x16xf32>
    %318 = arith.mulf %317, %288 : vector<16x16xf32>
    %319 = vector.shape_cast %318 : vector<16x16xf32> to vector<1x16x16xf32>
    %cst_167 = arith.constant dense<0.000000e+00> : vector<1xf32>
    %320 = vector.multi_reduction <add>, %319, %cst_167 [1, 2] : vector<1x16x16xf32> to vector<1xf32>
    %321 = vector.shape_cast %320 : vector<1xf32> to vector<1x1x1xf32>
    %322 = vector.extract %321[0, 0, 0] : f32 from vector<1x1x1xf32>
    %323 = arith.addf %155, %322 : f32
    %324 = arith.mulf %308, %309 : vector<16x16xf32>
    %325 = vector.shape_cast %324 : vector<16x16xf32> to vector<1x16x16xf32>
    %cst_168 = arith.constant dense<0.000000e+00> : vector<1xf32>
    %326 = vector.multi_reduction <add>, %325, %cst_168 [1, 2] : vector<1x16x16xf32> to vector<1xf32>
    %327 = vector.shape_cast %326 : vector<1xf32> to vector<1x1x1xf32>
    %328 = vector.extract %327[0, 0, 0] : f32 from vector<1x1x1xf32>
    %329 = arith.addf %161, %328 : f32
    %330 = vector.shape_cast %308 : vector<16x16xf32> to vector<1x16x16xf32>
    %cst_169 = arith.constant dense<0.000000e+00> : vector<1xf32>
    %331 = vector.multi_reduction <add>, %330, %cst_169 [1, 2] : vector<1x16x16xf32> to vector<1xf32>
    %332 = vector.shape_cast %331 : vector<1xf32> to vector<1x1x1xf32>
    %333 = vector.extract %332[0, 0, 0] : f32 from vector<1x1x1xf32>
    %334 = arith.addf %166, %333 : f32
    %335 = vector.shape_cast %309 : vector<16x16xf32> to vector<1x16x16xf32>
    %cst_170 = arith.constant dense<0.000000e+00> : vector<1xf32>
    %336 = vector.multi_reduction <add>, %335, %cst_170 [1, 2] : vector<1x16x16xf32> to vector<1xf32>
    %337 = vector.shape_cast %336 : vector<1xf32> to vector<1x1x1xf32>
    %338 = vector.extract %337[0, 0, 0] : f32 from vector<1x1x1xf32>
    %339 = arith.addf %171, %338 : f32
    %c0_171 = arith.constant 0 : index
    %c0_172 = arith.constant 0 : index
    %c0_173 = arith.constant 0 : index
    %340 = vector.load %arg10[%c0_171, %c0_172, %c0_173] : memref<2x64x16xf32, #tpu.memory_space<vmem>>, vector<1x64x16xf32>
    %341 = vector.shape_cast %340 : vector<1x64x16xf32> to vector<64x16xf32>
    %c1_174 = arith.constant 1 : index
    %c0_175 = arith.constant 0 : index
    %c0_176 = arith.constant 0 : index
    %342 = vector.load %arg10[%c1_174, %c0_175, %c0_176] : memref<2x64x16xf32, #tpu.memory_space<vmem>>, vector<1x64x16xf32>
    %343 = vector.shape_cast %342 : vector<1x64x16xf32> to vector<64x16xf32>
    %c0_177 = arith.constant 0 : index
    %c0_178 = arith.constant 0 : index
    %c0_179 = arith.constant 0 : index
    %344 = vector.load %arg7[%c0_177, %c0_178, %c0_179] : memref<2x16x176xf32, #tpu.memory_space<vmem>>, vector<1x16x176xf32>
    %345 = vector.shape_cast %344 : vector<1x16x176xf32> to vector<16x176xf32>
    %cst_180 = arith.constant dense<0.000000e+00> : vector<64x176xf32>
    %346 = tpu.matmul %341, %345, %cst_180 {dimension_numbers = #tpu.dot_dimension_numbers<[1], [0], [0], [1], [0, 0, 1, 1], [], []>} : vector<64x16xf32>, vector<16x176xf32>, vector<64x176xf32> -> vector<64x176xf32>
    %c1_181 = arith.constant 1 : index
    %c0_182 = arith.constant 0 : index
    %c0_183 = arith.constant 0 : index
    %347 = vector.load %arg7[%c1_181, %c0_182, %c0_183] : memref<2x16x176xf32, #tpu.memory_space<vmem>>, vector<1x16x176xf32>
    %348 = vector.shape_cast %347 : vector<1x16x176xf32> to vector<16x176xf32>
    %cst_184 = arith.constant dense<0.000000e+00> : vector<64x176xf32>
    %349 = tpu.matmul %343, %348, %cst_184 {dimension_numbers = #tpu.dot_dimension_numbers<[1], [0], [0], [1], [0, 0, 1, 1], [], []>} : vector<64x16xf32>, vector<16x176xf32>, vector<64x176xf32> -> vector<64x176xf32>
    %350 = vector.extract_strided_slice %346 {offsets = [3, 0], sizes = [16, 16], strides = [1, 1]} : vector<64x176xf32> to vector<16x16xf32>
    %351 = vector.extract_strided_slice %349 {offsets = [3, 0], sizes = [16, 16], strides = [1, 1]} : vector<64x176xf32> to vector<16x16xf32>
    %352 = vector.extract_strided_slice %346 {offsets = [4, 16], sizes = [16, 16], strides = [1, 1]} : vector<64x176xf32> to vector<16x16xf32>
    %353 = arith.addf %350, %352 : vector<16x16xf32>
    %354 = vector.extract_strided_slice %349 {offsets = [4, 16], sizes = [16, 16], strides = [1, 1]} : vector<64x176xf32> to vector<16x16xf32>
    %355 = arith.addf %351, %354 : vector<16x16xf32>
    %356 = vector.extract_strided_slice %346 {offsets = [5, 32], sizes = [16, 16], strides = [1, 1]} : vector<64x176xf32> to vector<16x16xf32>
    %357 = arith.addf %353, %356 : vector<16x16xf32>
    %358 = vector.extract_strided_slice %349 {offsets = [5, 32], sizes = [16, 16], strides = [1, 1]} : vector<64x176xf32> to vector<16x16xf32>
    %359 = arith.addf %355, %358 : vector<16x16xf32>
    %360 = vector.extract_strided_slice %346 {offsets = [6, 48], sizes = [16, 16], strides = [1, 1]} : vector<64x176xf32> to vector<16x16xf32>
    %361 = arith.addf %357, %360 : vector<16x16xf32>
    %362 = vector.extract_strided_slice %349 {offsets = [6, 48], sizes = [16, 16], strides = [1, 1]} : vector<64x176xf32> to vector<16x16xf32>
    %363 = arith.addf %359, %362 : vector<16x16xf32>
    %364 = vector.extract_strided_slice %346 {offsets = [7, 64], sizes = [16, 16], strides = [1, 1]} : vector<64x176xf32> to vector<16x16xf32>
    %365 = arith.addf %361, %364 : vector<16x16xf32>
    %366 = vector.extract_strided_slice %349 {offsets = [7, 64], sizes = [16, 16], strides = [1, 1]} : vector<64x176xf32> to vector<16x16xf32>
    %367 = arith.addf %363, %366 : vector<16x16xf32>
    %368 = vector.extract_strided_slice %346 {offsets = [8, 80], sizes = [16, 16], strides = [1, 1]} : vector<64x176xf32> to vector<16x16xf32>
    %369 = arith.addf %365, %368 : vector<16x16xf32>
    %370 = vector.extract_strided_slice %349 {offsets = [8, 80], sizes = [16, 16], strides = [1, 1]} : vector<64x176xf32> to vector<16x16xf32>
    %371 = arith.addf %367, %370 : vector<16x16xf32>
    %372 = vector.extract_strided_slice %346 {offsets = [9, 96], sizes = [16, 16], strides = [1, 1]} : vector<64x176xf32> to vector<16x16xf32>
    %373 = arith.addf %369, %372 : vector<16x16xf32>
    %374 = vector.extract_strided_slice %349 {offsets = [9, 96], sizes = [16, 16], strides = [1, 1]} : vector<64x176xf32> to vector<16x16xf32>
    %375 = arith.addf %371, %374 : vector<16x16xf32>
    %376 = vector.extract_strided_slice %346 {offsets = [10, 112], sizes = [16, 16], strides = [1, 1]} : vector<64x176xf32> to vector<16x16xf32>
    %377 = arith.addf %373, %376 : vector<16x16xf32>
    %378 = vector.extract_strided_slice %349 {offsets = [10, 112], sizes = [16, 16], strides = [1, 1]} : vector<64x176xf32> to vector<16x16xf32>
    %379 = arith.addf %375, %378 : vector<16x16xf32>
    %380 = vector.extract_strided_slice %346 {offsets = [11, 128], sizes = [16, 16], strides = [1, 1]} : vector<64x176xf32> to vector<16x16xf32>
    %381 = arith.addf %377, %380 : vector<16x16xf32>
    %382 = vector.extract_strided_slice %349 {offsets = [11, 128], sizes = [16, 16], strides = [1, 1]} : vector<64x176xf32> to vector<16x16xf32>
    %383 = arith.addf %379, %382 : vector<16x16xf32>
    %384 = vector.extract_strided_slice %346 {offsets = [12, 144], sizes = [16, 16], strides = [1, 1]} : vector<64x176xf32> to vector<16x16xf32>
    %385 = arith.addf %381, %384 : vector<16x16xf32>
    %386 = vector.extract_strided_slice %349 {offsets = [12, 144], sizes = [16, 16], strides = [1, 1]} : vector<64x176xf32> to vector<16x16xf32>
    %387 = arith.addf %383, %386 : vector<16x16xf32>
    %388 = vector.extract_strided_slice %346 {offsets = [13, 160], sizes = [16, 16], strides = [1, 1]} : vector<64x176xf32> to vector<16x16xf32>
    %389 = arith.addf %385, %388 : vector<16x16xf32>
    %390 = vector.extract_strided_slice %349 {offsets = [13, 160], sizes = [16, 16], strides = [1, 1]} : vector<64x176xf32> to vector<16x16xf32>
    %391 = arith.addf %387, %390 : vector<16x16xf32>
    %c0_185 = arith.constant 0 : index
    %c0_186 = arith.constant 0 : index
    %c0_187 = arith.constant 0 : index
    %392 = vector.load %arg11[%c0_185, %c0_186, %c0_187] : memref<2x16x16xf32, #tpu.memory_space<vmem>>, vector<1x16x16xf32>
    %393 = vector.shape_cast %392 : vector<1x16x16xf32> to vector<16x16xf32>
    %394 = arith.mulf %389, %389 : vector<16x16xf32>
    %395 = arith.mulf %391, %391 : vector<16x16xf32>
    %396 = arith.addf %394, %395 : vector<16x16xf32>
    %397 = arith.mulf %396, %393 : vector<16x16xf32>
    %398 = vector.shape_cast %397 : vector<16x16xf32> to vector<1x16x16xf32>
    %cst_188 = arith.constant dense<0.000000e+00> : vector<1xf32>
    %399 = vector.multi_reduction <add>, %398, %cst_188 [1, 2] : vector<1x16x16xf32> to vector<1xf32>
    %400 = vector.shape_cast %399 : vector<1xf32> to vector<1x1x1xf32>
    %401 = vector.extract %400[0, 0, 0] : f32 from vector<1x1x1xf32>
    %cst_189 = arith.constant 0.000000e+00 : f32
    %402 = arith.addf %cst_189, %401 : f32
    %403 = vector.extract_strided_slice %346 {offsets = [35, 0], sizes = [16, 16], strides = [1, 1]} : vector<64x176xf32> to vector<16x16xf32>
    %404 = vector.extract_strided_slice %349 {offsets = [35, 0], sizes = [16, 16], strides = [1, 1]} : vector<64x176xf32> to vector<16x16xf32>
    %405 = vector.extract_strided_slice %346 {offsets = [36, 16], sizes = [16, 16], strides = [1, 1]} : vector<64x176xf32> to vector<16x16xf32>
    %406 = arith.addf %403, %405 : vector<16x16xf32>
    %407 = vector.extract_strided_slice %349 {offsets = [36, 16], sizes = [16, 16], strides = [1, 1]} : vector<64x176xf32> to vector<16x16xf32>
    %408 = arith.addf %404, %407 : vector<16x16xf32>
    %409 = vector.extract_strided_slice %346 {offsets = [37, 32], sizes = [16, 16], strides = [1, 1]} : vector<64x176xf32> to vector<16x16xf32>
    %410 = arith.addf %406, %409 : vector<16x16xf32>
    %411 = vector.extract_strided_slice %349 {offsets = [37, 32], sizes = [16, 16], strides = [1, 1]} : vector<64x176xf32> to vector<16x16xf32>
    %412 = arith.addf %408, %411 : vector<16x16xf32>
    %413 = vector.extract_strided_slice %346 {offsets = [38, 48], sizes = [16, 16], strides = [1, 1]} : vector<64x176xf32> to vector<16x16xf32>
    %414 = arith.addf %410, %413 : vector<16x16xf32>
    %415 = vector.extract_strided_slice %349 {offsets = [38, 48], sizes = [16, 16], strides = [1, 1]} : vector<64x176xf32> to vector<16x16xf32>
    %416 = arith.addf %412, %415 : vector<16x16xf32>
    %417 = vector.extract_strided_slice %346 {offsets = [39, 64], sizes = [16, 16], strides = [1, 1]} : vector<64x176xf32> to vector<16x16xf32>
    %418 = arith.addf %414, %417 : vector<16x16xf32>
    %419 = vector.extract_strided_slice %349 {offsets = [39, 64], sizes = [16, 16], strides = [1, 1]} : vector<64x176xf32> to vector<16x16xf32>
    %420 = arith.addf %416, %419 : vector<16x16xf32>
    %421 = vector.extract_strided_slice %346 {offsets = [40, 80], sizes = [16, 16], strides = [1, 1]} : vector<64x176xf32> to vector<16x16xf32>
    %422 = arith.addf %418, %421 : vector<16x16xf32>
    %423 = vector.extract_strided_slice %349 {offsets = [40, 80], sizes = [16, 16], strides = [1, 1]} : vector<64x176xf32> to vector<16x16xf32>
    %424 = arith.addf %420, %423 : vector<16x16xf32>
    %425 = vector.extract_strided_slice %346 {offsets = [41, 96], sizes = [16, 16], strides = [1, 1]} : vector<64x176xf32> to vector<16x16xf32>
    %426 = arith.addf %422, %425 : vector<16x16xf32>
    %427 = vector.extract_strided_slice %349 {offsets = [41, 96], sizes = [16, 16], strides = [1, 1]} : vector<64x176xf32> to vector<16x16xf32>
    %428 = arith.addf %424, %427 : vector<16x16xf32>
    %429 = vector.extract_strided_slice %346 {offsets = [42, 112], sizes = [16, 16], strides = [1, 1]} : vector<64x176xf32> to vector<16x16xf32>
    %430 = arith.addf %426, %429 : vector<16x16xf32>
    %431 = vector.extract_strided_slice %349 {offsets = [42, 112], sizes = [16, 16], strides = [1, 1]} : vector<64x176xf32> to vector<16x16xf32>
    %432 = arith.addf %428, %431 : vector<16x16xf32>
    %433 = vector.extract_strided_slice %346 {offsets = [43, 128], sizes = [16, 16], strides = [1, 1]} : vector<64x176xf32> to vector<16x16xf32>
    %434 = arith.addf %430, %433 : vector<16x16xf32>
    %435 = vector.extract_strided_slice %349 {offsets = [43, 128], sizes = [16, 16], strides = [1, 1]} : vector<64x176xf32> to vector<16x16xf32>
    %436 = arith.addf %432, %435 : vector<16x16xf32>
    %437 = vector.extract_strided_slice %346 {offsets = [44, 144], sizes = [16, 16], strides = [1, 1]} : vector<64x176xf32> to vector<16x16xf32>
    %438 = arith.addf %434, %437 : vector<16x16xf32>
    %439 = vector.extract_strided_slice %349 {offsets = [44, 144], sizes = [16, 16], strides = [1, 1]} : vector<64x176xf32> to vector<16x16xf32>
    %440 = arith.addf %436, %439 : vector<16x16xf32>
    %441 = vector.extract_strided_slice %346 {offsets = [45, 160], sizes = [16, 16], strides = [1, 1]} : vector<64x176xf32> to vector<16x16xf32>
    %442 = arith.addf %438, %441 : vector<16x16xf32>
    %443 = vector.extract_strided_slice %349 {offsets = [45, 160], sizes = [16, 16], strides = [1, 1]} : vector<64x176xf32> to vector<16x16xf32>
    %444 = arith.addf %440, %443 : vector<16x16xf32>
    %c1_190 = arith.constant 1 : index
    %c0_191 = arith.constant 0 : index
    %c0_192 = arith.constant 0 : index
    %445 = vector.load %arg11[%c1_190, %c0_191, %c0_192] : memref<2x16x16xf32, #tpu.memory_space<vmem>>, vector<1x16x16xf32>
    %446 = vector.shape_cast %445 : vector<1x16x16xf32> to vector<16x16xf32>
    %447 = arith.mulf %442, %442 : vector<16x16xf32>
    %448 = arith.mulf %444, %444 : vector<16x16xf32>
    %449 = arith.addf %447, %448 : vector<16x16xf32>
    %450 = arith.mulf %449, %446 : vector<16x16xf32>
    %451 = vector.shape_cast %450 : vector<16x16xf32> to vector<1x16x16xf32>
    %cst_193 = arith.constant dense<0.000000e+00> : vector<1xf32>
    %452 = vector.multi_reduction <add>, %451, %cst_193 [1, 2] : vector<1x16x16xf32> to vector<1xf32>
    %453 = vector.shape_cast %452 : vector<1xf32> to vector<1x1x1xf32>
    %454 = vector.extract %453[0, 0, 0] : f32 from vector<1x1x1xf32>
    %455 = arith.addf %402, %454 : f32
    %c0_194 = arith.constant 0 : index
    %c0_195 = arith.constant 0 : index
    %456 = memref.load %arg9[%c0_194, %c0_195] : memref<1x6xf32, #tpu.memory_space<smem>>
    memref.store %314, %arg9[%c0_194, %c0_195] : memref<1x6xf32, #tpu.memory_space<smem>>
    %c0_196 = arith.constant 0 : index
    %c1_197 = arith.constant 1 : index
    %457 = memref.load %arg9[%c0_196, %c1_197] : memref<1x6xf32, #tpu.memory_space<smem>>
    memref.store %323, %arg9[%c0_196, %c1_197] : memref<1x6xf32, #tpu.memory_space<smem>>
    %c0_198 = arith.constant 0 : index
    %c2_199 = arith.constant 2 : index
    %458 = memref.load %arg9[%c0_198, %c2_199] : memref<1x6xf32, #tpu.memory_space<smem>>
    memref.store %455, %arg9[%c0_198, %c2_199] : memref<1x6xf32, #tpu.memory_space<smem>>
    %c0_200 = arith.constant 0 : index
    %c3_201 = arith.constant 3 : index
    %459 = memref.load %arg9[%c0_200, %c3_201] : memref<1x6xf32, #tpu.memory_space<smem>>
    memref.store %329, %arg9[%c0_200, %c3_201] : memref<1x6xf32, #tpu.memory_space<smem>>
    %c0_202 = arith.constant 0 : index
    %c4 = arith.constant 4 : index
    %460 = memref.load %arg9[%c0_202, %c4] : memref<1x6xf32, #tpu.memory_space<smem>>
    memref.store %334, %arg9[%c0_202, %c4] : memref<1x6xf32, #tpu.memory_space<smem>>
    %c0_203 = arith.constant 0 : index
    %c5 = arith.constant 5 : index
    %461 = memref.load %arg9[%c0_203, %c5] : memref<1x6xf32, #tpu.memory_space<smem>>
    memref.store %339, %arg9[%c0_203, %c5] : memref<1x6xf32, #tpu.memory_space<smem>>
    return
  }
  func.func @transform_0(%arg0: i32) -> (i32, i32, i32, i32) {
    %c0_i32 = arith.constant 0 : i32
    %c0_i32_0 = arith.constant 0 : i32
    %c0_i32_1 = arith.constant 0 : i32
    %c0_i32_2 = arith.constant 0 : i32
    return %arg0, %c0_i32, %c0_i32_0, %c0_i32_1 : i32, i32, i32, i32
  }
  func.func @transform_1(%arg0: i32) -> (i32, i32, i32) {
    %c0_i32 = arith.constant 0 : i32
    %c0_i32_0 = arith.constant 0 : i32
    %c0_i32_1 = arith.constant 0 : i32
    return %arg0, %c0_i32, %c0_i32_0 : i32, i32, i32
  }
  func.func @transform_2(%arg0: i32) -> (i32, i32, i32, i32) {
    %c0_i32 = arith.constant 0 : i32
    %c0_i32_0 = arith.constant 0 : i32
    %c0_i32_1 = arith.constant 0 : i32
    %c0_i32_2 = arith.constant 0 : i32
    return %arg0, %c0_i32, %c0_i32_0, %c0_i32_1 : i32, i32, i32, i32
  }
  func.func @transform_3(%arg0: i32) -> (i32, i32, i32, i32) {
    %c0_i32 = arith.constant 0 : i32
    %c0_i32_0 = arith.constant 0 : i32
    %c0_i32_1 = arith.constant 0 : i32
    %c0_i32_2 = arith.constant 0 : i32
    return %arg0, %c0_i32, %c0_i32_0, %c0_i32_1 : i32, i32, i32, i32
  }
  func.func @transform_4(%arg0: i32) -> (i32, i32, i32) {
    %c0_i32 = arith.constant 0 : i32
    %c0_i32_0 = arith.constant 0 : i32
    %c0_i32_1 = arith.constant 0 : i32
    return %arg0, %c0_i32, %c0_i32_0 : i32, i32, i32
  }
  func.func @transform_5(%arg0: i32) -> (i32, i32, i32) {
    %c0_i32 = arith.constant 0 : i32
    %c0_i32_0 = arith.constant 0 : i32
    %c0_i32_1 = arith.constant 0 : i32
    return %arg0, %c0_i32, %c0_i32_0 : i32, i32, i32
  }
  func.func @transform_6(%arg0: i32) -> (i32, i32, i32) {
    %c0_i32 = arith.constant 0 : i32
    %c0_i32_0 = arith.constant 0 : i32
    %c0_i32_1 = arith.constant 0 : i32
    %c0_i32_2 = arith.constant 0 : i32
    return %c0_i32, %c0_i32_0, %c0_i32_1 : i32, i32, i32
  }
  func.func @transform_7(%arg0: i32) -> i32 {
    %c0_i32 = arith.constant 0 : i32
    %c0_i32_0 = arith.constant 0 : i32
    return %c0_i32 : i32
  }
  func.func @transform_8(%arg0: i32) -> (i32, i32) {
    %c0_i32 = arith.constant 0 : i32
    %c0_i32_0 = arith.constant 0 : i32
    return %arg0, %c0_i32 : i32, i32
  }
}

</mosaic_0001>

<bundles_post_ra>
// kernel: tpu_custom_call.1
= control target key start
LH: loop header
LB: loop body
LE: loop exit
PB: predicated region body
PF: predicated region fallthrough
CT: control target
= control target key end

     0   :  { %13 = vsyncpa [#allocation5], 0  ;;  %s3225_s0 = inlined_call_operand.hbm [shape: f32[2,4,16,16], index: 0, kind: input, shape index: {}]   ;;  %s3226_s1 = inlined_call_operand.hbm [shape: s32[2,16,16], index: 1, kind: input, shape index: {}]   ;;  %s3227_s2 = inlined_call_operand.hbm [shape: f32[2,2,16,16], index: 2, kind: input, shape index: {}]   ;;  %s3228_s3 = inlined_call_operand.hbm [shape: f32[2,2,16,16], index: 3, kind: input, shape index: {}]   ;;  %s3229_s4 = inlined_call_operand.hbm [shape: f32[2,16,16], index: 4, kind: input, shape index: {}]   ;;  %s3230_s5 = inlined_call_operand.hbm [shape: f32[2,16,16], index: 5, kind: input, shape index: {}]   ;;  %s3231_s6 = inlined_call_operand.hbm [shape: f32[2,16,176], index: 6, kind: input, shape index: {}]   ;;  %s3232_s7 = inlined_call_operand.vmem [shape: f32[4], index: 7, kind: input, shape index: {}]   ;;  %s3233_s8 = inlined_call_operand.hbm [shape: f32[1,6], index: 8, kind: output, shape index: {}]  }
   0x1   :  { %14 = vsyncpa [#allocation9], 0 }
   0x2   :  { %15 = vsyncpa [#allocation12], 0 }
   0x3   :  { %16 = vsyncpa [#allocation15], 0 }
   0x4   :  { %17 = vsyncpa [#allocation7], 0 }
   0x5   :  { %18 = vsyncpa [#allocation6], 0  ;;  %s36_s29 = sshll.u32 %s3226_s1, 4  ;;  %s2048_s30 = smov [#allocation8]   ;;  %s37_s29 = int_to_ptr.hbm [resolvable:$true] %s36_s29 }
   0x6   :  { %s38_s9 = sshll.u32 %s2048_s30, 4  ;;  %s62_s12 = sshll.u32 %s3228_s3, 4  ;;  %s39_s9 = int_to_ptr.vmem [resolvable:$true] %s38_s9  ;;  %s63_s12 = int_to_ptr.hbm [resolvable:$true] %s62_s12 }
   0x7   :  { %s2049_s13 = smov 128   ;;  %s2050_s14 = smov 8  }
   0x8   :  { %44 = dma.hbm_to_vmem [thread:$0]  %s37_s29, 512, %s39_s9, [#allocation9], %s2049_s13, %s2049_s13, %s2050_s14  }
   0x9   :  { %s2051_s15 = smov [#allocation11]   ;;  %s88_s1 = sshll.u32 %s3230_s5, 4  ;;  %s89_s1 = int_to_ptr.hbm [resolvable:$true] %s88_s1 }
   0xa   :  { %s64_s16 = sshll.u32 %s2051_s15, 4  ;;  %s23_s20 = sshll.u32 %s3225_s0, 4  ;;  %s65_s16 = int_to_ptr.vmem [resolvable:$true] %s64_s16  ;;  %s24_s20 = int_to_ptr.hbm [resolvable:$true] %s23_s20 }
   0xb   :  { %70 = dma.hbm_to_vmem [thread:$0]  %s63_s12, 1024, %s65_s16, [#allocation12], %s2049_s13, %s2049_s13, %s2050_s14  }
   0xc   :  { %s2052_s21 = smov [#allocation14]   ;;  %s2053_s23 = smov [#allocation4]  }
   0xd   :  { %s90_s22 = sshll.u32 %s2052_s21, 4  ;;  %s25_s5 = sshll.u32 %s2053_s23, 4  ;;  %s91_s22 = int_to_ptr.vmem [resolvable:$true] %s90_s22  ;;  %s26_s5 = int_to_ptr.vmem [resolvable:$true] %s25_s5 }
   0xe   :  { %96 = dma.hbm_to_vmem [thread:$0]  %s89_s1, 512, %s91_s22, [#allocation15], %s2049_s13, %s2049_s13, %s2050_s14  }
   0xf   :  { %s49_s26 = sshll.u32 %s3227_s2, 4  ;;  %s75_s28 = sshll.u32 %s3229_s4, 4  ;;  %s50_s26 = int_to_ptr.hbm [resolvable:$true] %s49_s26  ;;  %s76_s28 = int_to_ptr.hbm [resolvable:$true] %s75_s28 }
  0x10   :  { %31 = dma.hbm_to_vmem [thread:$0]  %s24_s20, 2048, %s26_s5, [#allocation5], %s2049_s13, %s2049_s13, %s2050_s14  }
  0x11   :  { %s2054_s29 = smov [#allocation10]   ;;  %s2055_s9 = smov [#allocation13]  }
  0x12   :  { %s51_s30 = sshll.u32 %s2054_s29, 4  ;;  %s77_s2 = sshll.u32 %s2055_s9, 4  ;;  %s52_s30 = int_to_ptr.vmem [resolvable:$true] %s51_s30  ;;  %s78_s2 = int_to_ptr.vmem [resolvable:$true] %s77_s2 }
  0x13   :  { %57 = dma.hbm_to_vmem [thread:$0]  %s50_s26, 1024, %s52_s30, [#allocation9], %s2049_s13, %s2049_s13, %s2050_s14  }
  0x14   :  { %s101_s12 = sshll.u32 %s3231_s6, 4  ;;  %s2056_s4 = smov [#allocation16]   ;;  %s102_s12 = int_to_ptr.hbm [resolvable:$true] %s101_s12 }
  0x15   :  { %83 = dma.hbm_to_vmem [thread:$0]  %s76_s28, 512, %s78_s2, [#allocation12], %s2049_s13, %s2049_s13, %s2050_s14  }
  0x16   :  { %s103_s15 = sshll.u32 %s2056_s4, 4  ;;  %s115_s18 = sshll.u32 %s3232_s7, 4  ;;  %s104_s15 = int_to_ptr.vmem [resolvable:$true] %s103_s15  ;;  %s116_s18 = int_to_ptr.vmem [resolvable:$true] %s115_s18 }
  0x17   :  { %s2057_s1 = smov 256   ;;  %s2058_s3 = smov 16  }
  0x18   :  { %109 = dma.hbm_to_vmem [thread:$0]  %s102_s12, 1024, %s104_s15, [#allocation15], %s2057_s1, %s2057_s1, %s2058_s3  }
  0x19   :  { %s2059_s19 = smov [#allocation17]  }
  0x1a   :  { %118 = dma.vmem_to_smem %s116_s18, 16, %s2059_s19, [#allocation7]  }
  0x1b   :  { %2036 = dma.done.wait [#allocation5], 2048  }
  0x1c   :  { %2037 = vsyncadd [#allocation5], 4294965248 }
  0x1d   :  { %2038 = dma.done.wait [#allocation9], 1536  }
  0x1e   :  { %2039 = vsyncadd [#allocation9], 4294965760 }
  0x1f   :  { %2040 = dma.done.wait [#allocation12], 1536  }
  0x20   :  { %2041 = vsyncadd [#allocation12], 4294965760 }
  0x21   :  { %2042 = dma.done.wait [#allocation15], 1536  }
  0x22   :  { %2043 = vsyncadd [#allocation15], 4294965760 }
  0x23   :  { %2044 = dma.done.wait [#allocation7], 16  }
  0x24   :  { %2045 = vsyncadd [#allocation7], 4294967280 }
  0x25   :  { %151 = sfence }
  0x26   :  { %v711_v0 = vld [vmem:[#allocation16 + $0x10] sm:$0xff]  ;;  %v709_v1 = vld [vmem:[#allocation16] sm:$0xff]  ;;  %vm156_vm0 = vcmask 130048   ;;  %v2060_v2 = vmov 0.0   ;;  %v328_v5 = vld [vmem:[#allocation10 + $0x8] sm:$0xff]  ;;  %v2061_v40 = vmov 0  }
  0x27   :  { %751 = vmatpush.msra.mxu0 %v711_v0  ;;  %157 = vst.msk [vmem:[#allocation2] sm:$0xff] %vm156_vm0, %v2060_v2  ;;  %v327_v3 = vld [vmem:[#allocation10] sm:$0xff]  ;;  %v330_v6 = vld [vmem:[#allocation11 + $0x8] sm:$0xff]  ;;  %v820_v7 = vld [vmem:[#allocation16 + $0x30] sm:$0xff]  ;;  %s2283_s6 = sld [smem:[#allocation17]]  ;;  %s2063_s20 = smov 48  }
  0x28   :  { %v329_v4 = vld [vmem:[#allocation11] sm:$0xff]  ;;  %159 = vst.msk [vmem:[#allocation2 + $0x40] sm:$0xff] %vm156_vm0, %v2060_v2  ;;  %860 = vmatpush.msra.mxu2 %v820_v7  ;;  %v334_v9 = vld [vmem:[#allocation10 + $0x10] sm:$0xff]  ;;  %v335_v11 = vld [vmem:[#allocation10 + $0x18] sm:$0xff]  ;;  %v2179_v20 = vsub.f32 %v328_v5, %v330_v6  ;;  %s2294_s7 = sld [smem:[#allocation17 + $0x1]]  ;;  %s2064_s21 = smov 112  }
  0x29   :  { %v818_v8 = vld [vmem:[#allocation16 + $0x20] sm:$0xff]  ;;  %752 = vmatpush.msra.mxu0 %v709_v1  ;;  %160 = vst.msk [vmem:[#allocation2 + $0x18] sm:$0xff] %vm156_vm0, %v2060_v2  ;;  %v337_v10 = vld [vmem:[#allocation11 + $0x10] sm:$0xff]  ;;  %v712_v12 = vld [vmem:[#allocation16 + $0x18] sm:$0xff]  ;;  %v2170_v15 = vsub.f32 %v327_v3, %v329_v4  ;;  %s2316_s13 = sld [smem:[#allocation17 + $0x2]]  ;;  %s2065_s22 = smov 32  }
  0x2a   :  { %161 = vst.msk [vmem:[#allocation2 + $0x58] sm:$0xff] %vm156_vm0, %v2060_v2  ;;  %v710_v13 = vld [vmem:[#allocation16 + $0x8] sm:$0xff]  ;;  %v2166_v14 = vld [vmem:[#allocation8 + $0x10] sm:$0xff]  ;;  %861 = vmatpush.msra.mxu2 %v818_v8  ;;  %v338_v16 = vld [vmem:[#allocation11 + $0x18] sm:$0xff]  ;;  %792 = vmatpush.msra.mxu1 %v712_v12  ;;  %v2190_v25 = vsub.f32 %v334_v9, %v337_v10  ;;  %s2329_s14 = sld [smem:[#allocation17 + $0x3]]  ;;  %s2066_s23 = smov 96  }
  0x2b   :  { %424 = vst.msk [vmem:[#allocation2 + $0x20] sm:$0xff] %vm156_vm0, %v2060_v2  ;;  %v2172_v17 = vld [vmem:[#allocation8 + $0x18] sm:$0xff]  ;;  %v3235_v18 = vcvt.s32.f32 %v2166_v14  ;;  %v2175_v19 = vld [vmem:[#allocation8] sm:$0xff]  ;;  %v2182_v22 = vld [vmem:[#allocation8 + $0x8] sm:$0xff]  ;;  %v2203_v32 = vsub.f32 %v335_v11, %v338_v16  ;;  %s2067_s5 = smov 80   ;;  %s2068_s24 = smov 64  }
  0x2c   :  { %425 = vst.msk [vmem:[#allocation2 + $0x60] sm:$0xff] %vm156_vm0, %v2060_v2  ;;  %v3234_v21 = vcvt.s32.f32 %v2172_v17  ;;  %v2184_v23 = vld [vmem:[#allocation4] sm:$0xff]  ;;  %v2186_v24 = vld [vmem:[#allocation4 + $0x8] sm:$0xff]  ;;  %793 = vmatpush.msra.mxu1 %v710_v13  ;;  %v347_v27 = vcvt.s32.f32 %v2175_v19  ;;  %v3236_v28 = vcvt.s32.f32 %v2182_v22  ;;  %v2197_v29 = vld [vmem:[#allocation4 + $0x10] sm:$0xff]  ;;  %vm235_vm7 = vcmp.eq.s32.totalorder %v2175_v19, 0  ;;  %s1684_s1 = sshll.u32 %s3233_s8, 4  ;;  %s1685_s1 = int_to_ptr.hbm [resolvable:$true] %s1684_s1 }
  0x2d   :  { %426 = vst.msk [vmem:[#allocation2 + $0x38] sm:$0xff] %vm156_vm0, %v2060_v2  ;;  %v680_v26 = vsel %vm156_vm0, %v3235_v18, 0.0  ;;  %v2199_v30 = vld [vmem:[#allocation4 + $0x18] sm:$0xff]  ;;  %v2208_v34 = vld [vmem:[#allocation4 + $0x20] sm:$0xff]  ;;  %v2210_v35 = vld [vmem:[#allocation4 + $0x28] sm:$0xff]  ;;  %vm179_vm1 = vcmp.gt.f32.partialorder %v2197_v29, %v2184_v23  ;;  %vm236_vm8 = vcmp.eq.s32.totalorder %v2182_v22, 0 }
  0x2e   :  { %v693_v31 = vld [vmem:[#allocation2] sm:$0xff]  ;;  %427 = vst.msk [vmem:[#allocation2 + $0x78] sm:$0xff] %vm156_vm0, %v2060_v2  ;;  %v681_v33 = vsel %vm156_vm0, %v3234_v21, 0.0  ;;  %vm180_vm2 = vcmp.gt.f32.partialorder %v2199_v30, %v2186_v24  ;;  %v411_v38 = vsel %vm156_vm0, %v347_v27, 0.0  ;;  %v412_v39 = vsel %vm156_vm0, %v3236_v28, 0.0  ;;  %v2236_v43 = vld [vmem:[#allocation4 + $0x30] sm:$0xff] }
  0x2f   :  { %1718 = vmatmul.msk.f32.vlgmr.msra.gmra.mxu0 %vm156_vm0, %v693_v31  ;;  %341 = vst.msk [vmem:[#allocation2 + $0x8] sm:$0xff] %vm156_vm0, %v2170_v15  ;;  %v2219_v36 = vld [vmem:[#allocation2 + $0x40] sm:$0xff]  ;;  %1726 = vmatmul.msk.f32.vlgmr.msra.gmra.mxu1 %vm156_vm0, %v693_v31  ;;  %v682_v37 = vadd.f32 %v681_v33, %v680_v26  ;;  %v181_v41 = vsel %vm179_vm1, 1, %v2061_v40  ;;  %v413_v42 = vadd.f32 %v412_v39, %v411_v38  ;;  %v2238_v44 = vld [vmem:[#allocation4 + $0x38] sm:$0xff]  ;;  %v182_v45 = vsel %vm180_vm2, 1, %v2061_v40  ;;  %v819_v31 = vld [vmem:[#allocation16 + $0x28] sm:$0xff] }
  0x30   :  { %342 = vst.msk [vmem:[#allocation2 + $0x10] sm:$0xff] %vm156_vm0, %v2179_v20  ;;  %1734 = vmatmul.msk.f32.vlgmr.msra.gmra.mxu2 %vm156_vm0, %v2219_v36  ;;  %v183_v46 = vsel %vm179_vm1, %v2197_v29, %v2184_v23  ;;  %v184_v47 = vsel %vm180_vm2, %v2199_v30, %v2186_v24  ;;  %vm269_vm9 = vcmp.eq.s32.totalorder %v2175_v19, 2  ;;  %vm270_vm10 = vcmp.eq.s32.totalorder %v2182_v22, 2  ;;  %v821_v26 = vld [vmem:[#allocation16 + $0x38] sm:$0xff] }
  0x31   :  { %343 = vst.msk [vmem:[#allocation2 + $0x48] sm:$0xff] %vm156_vm0, %v2190_v25  ;;  %683 = vadd.xlane.f32.xlu0 %v682_v37  ;;  %vm185_vm3 = vcmp.gt.f32.partialorder %v2208_v34, %v183_v46  ;;  %vm186_vm4 = vcmp.gt.f32.partialorder %v2210_v35, %v184_v47  ;;  %414 = vadd.xlane.f32.xlu2 %v413_v42  ;;  %v2303_v4 = vsel %vm235_vm7, 1.0, %v2060_v2  ;;  %v2310_v8 = vsel %vm236_vm8, 1.0, %v2060_v2 }
  0x32   :  { %344 = vst.msk [vmem:[#allocation2 + $0x50] sm:$0xff] %vm156_vm0, %v2203_v32  ;;  %v187_v48 = vsel %vm185_vm3, 2, %v181_v41  ;;  %v189_v49 = vsel %vm185_vm3, %v2208_v34, %v183_v46  ;;  %v190_v50 = vsel %vm186_vm4, %v2210_v35, %v184_v47  ;;  %v188_v51 = vsel %vm186_vm4, 2, %v182_v45  ;;  %901 = vmatpush.msra.mxu3 %v821_v26 }
  0x33   :  { %vm191_vm5 = vcmp.gt.f32.partialorder %v2236_v43, %v189_v49  ;;  %vm192_vm6 = vcmp.gt.f32.partialorder %v2238_v44, %v190_v50  ;;  %vm252_vm11 = vcmp.eq.s32.totalorder %v2175_v19, 1  ;;  %vm253_vm12 = vcmp.eq.s32.totalorder %v2182_v22, 1 }
  0x34   :  { %v2265_v52 = vsel %vm191_vm5, 3, %v187_v48  ;;  %v2268_v53 = vsel %vm191_vm5, %v2236_v43, %v189_v49  ;;  %v2271_v54 = vsel %vm192_vm6, %v2238_v44, %v190_v50  ;;  %v2286_v60 = vsel %vm192_vm6, 3, %v188_v51  ;;  %902 = vmatpush.msra.mxu3 %v819_v31  ;;  %v696_v31 = vld [vmem:[#allocation2 + $0x18] sm:$0xff] }
  0x35   :  { %v197_v55 = vsub.f32 %v2184_v23, %v2268_v53  ;;  %v198_v56 = vsub.f32 %v2186_v24, %v2271_v54  ;;  %v205_v57 = vsub.f32 %v2197_v29, %v2268_v53  ;;  %v206_v58 = vsub.f32 %v2199_v30, %v2271_v54  ;;  %1742 = vmatmul.msk.f32.vlgmr.msra.gmra.mxu3 %vm156_vm0, %v2219_v36 }
  0x36   :  { %v694_v59 = vld [vmem:[#allocation2 + $0x8] sm:$0xff]  ;;  %v213_v61 = vsub.f32 %v2208_v34, %v2268_v53  ;;  %v214_v62 = vsub.f32 %v2210_v35, %v2271_v54  ;;  %v221_v63 = vsub.f32 %v2236_v43, %v2268_v53  ;;  %v222_v3 = vsub.f32 %v2238_v44, %v2271_v54 }
  0x37   :  { %1719 = vmatmul.msk.f32.gmra.mxu0 %vm156_vm0, %v694_v59  ;;  %1727 = vmatmul.msk.f32.gmra.mxu1 %vm156_vm0, %v694_v59  ;;  %v199_v0 = vmul.f32 1.442695, %v197_v55  ;;  %v201_v1 = vmul.f32 1.442695, %v198_v56  ;;  %v207_v6 = vmul.f32 1.442695, %v205_v57  ;;  %v345_v10 = vcvt.s32.f32 %v2265_v52 }
  0x38   :  { %v2305_v5 = vld [vmem:[#allocation2 + $0x48] sm:$0xff]  ;;  %v209_v7 = vmul.f32 1.442695, %v206_v58  ;;  %v215_v9 = vmul.f32 1.442695, %v213_v61  ;;  %v2320_v16 = vsel %vm252_vm11, 1.0, %v2060_v2  ;;  %v3237_v38 = vcvt.s32.f32 %v2286_v60 }
  0x39   :  { %1735 = vmatmul.msk.f32.gmra.mxu2 %vm156_vm0, %v2305_v5  ;;  %1796 = vpow2.f32 %v199_v0  ;;  %v217_v11 = vmul.f32 1.442695, %v214_v62  ;;  %v223_v12 = vmul.f32 1.442695, %v221_v63  ;;  %v225_v13 = vmul.f32 1.442695, %v222_v3 }
  0x3a   :  { %1798 = vpow2.f32 %v201_v1  ;;  %vm315_vm13 = vcmp.eq.s32.totalorder %v2265_v52, 1  ;;  %v695_v33 = vld [vmem:[#allocation2 + $0x10] sm:$0xff]  ;;  %v2324_v37 = vsel %vm253_vm12, 1.0, %v2060_v2  ;;  %vm316_vm15 = vcmp.eq.s32.totalorder %v2286_v60, 1 }
  0x3b   :  { %1800 = vpow2.f32 %v207_v6  ;;  %vm317_vm14 = vmand %vm235_vm7, %vm315_vm13  ;;  %v398_v39 = vsel %vm156_vm0, %v345_v10, 0.0  ;;  %v2336_v41 = vstv %s2283_s6  ;;  %v2338_v42 = vld [vmem:[#allocation2 + $0x50] sm:$0xff]  ;;  %v2062_v45 = vmov 1.0  }
  0x3c   :  { %1802 = vpow2.f32 %v209_v7  ;;  %v2341_v46 = vsel %vm317_vm14, 0.0, %v2062_v45  ;;  %v399_v47 = vsel %vm156_vm0, %v3237_v38, 0.0  ;;  %v248_v48 = vmul.f32 %v2303_v4, %v2336_v41  ;;  %vm2401_vm3 = vmand %vm236_vm8, %vm316_vm15 }
  0x3d   :  { %1804 = vpow2.f32 %v215_v9  ;;  %v400_v50 = vadd.f32 %v399_v47, %v398_v39  ;;  %v249_v51 = vmul.f32 %v2310_v8, %v2336_v41  ;;  %v2352_v55 = vstv %s2294_s7  ;;  %1743 = vmatmul.msk.f32.gmra.mxu3 %vm156_vm0, %v2305_v5  ;;  %s2069_s7 = smov [#allocation18]  }
  0x3e   :  { %1806 = vpow2.f32 %v217_v11  ;;  %v265_v57 = vmul.f32 %v2320_v16, %v2352_v55  ;;  %v266_v58 = vmul.f32 %v2324_v37, %v2352_v55  ;;  %v2362_v59 = vsel %vm269_vm9, 1.0, %v2060_v2 }
  0x3f   :  { %v1797_v49 = vpop.eup %1796  ;;  %1720 = vmatmul.msk.f32.gmra.mxu0 %vm156_vm0, %v695_v33  ;;  %1808 = vpow2.f32 %v223_v12  ;;  %1728 = vmatmul.msk.f32.gmra.mxu1 %vm156_vm0, %v695_v33  ;;  %v2371_v62 = vsel %vm270_vm10, 1.0, %v2060_v2  ;;  %v2374_v63 = vstv %s2316_s13  ;;  %vm286_vm1 = vcmp.eq.s32.totalorder %v2175_v19, 3 }
  0x40   :  { %v1799_v56 = vpop.eup %1798  ;;  %1810 = vpow2.f32 %v225_v13  ;;  %401 = vadd.xlane.f32.xlu1 %v400_v50  ;;  %vm287_vm2 = vcmp.eq.s32.totalorder %v2182_v22, 3  ;;  %v267_v36 = vadd.f32 %v265_v57, %v248_v48  ;;  %v268_v3 = vadd.f32 %v266_v58, %v249_v51  ;;  %v2395_v50 = vld [vmem:[#allocation4 + $0x50] sm:$0xff]  ;;  %v2446_v57 = vld [vmem:[#allocation4 + $0x78] sm:$0xff] }
  0x41   :  { %v1801_v61 = vpop.eup %1800  ;;  %1736 = vmatmul.msk.f32.gmra.mxu2 %vm156_vm0, %v2338_v42  ;;  %v282_v6 = vmul.f32 %v2362_v59, %v2374_v63  ;;  %v283_v11 = vmul.f32 %v2371_v62, %v2374_v63  ;;  %v2383_v12 = vsel %vm286_vm1, 1.0, %v2060_v2  ;;  %v2386_v13 = vsel %vm287_vm2, 1.0, %v2060_v2 }
  0x42   :  { %v1803_v0 = vpop.eup %1802  ;;  %v211_v1 = vadd.f32 %v1801_v61, %v1797_v49  ;;  %3243 = vst [vmem:[#allocation25_spill] sm:$0xff] %v2386_v13  ;;  %v2389_v47 = vstv %s2329_s14  ;;  %v362_v48 = vmul.f32 %v2170_v15, %v2170_v15  ;;  %v2393_v49 = vld [vmem:[#allocation4 + $0x40] sm:$0xff]  ;;  %v363_v21 = vmul.f32 %v2179_v20, %v2179_v20 }
  0x43   :  { %v1805_v7 = vpop.eup %1804  ;;  %v212_v9 = vadd.f32 %v1803_v0, %v1799_v56  ;;  %v284_v39 = vadd.f32 %v282_v6, %v267_v36  ;;  %v285_v58 = vadd.f32 %v283_v11, %v268_v3  ;;  %v299_v61 = vmul.f32 %v2383_v12, %v2389_v47  ;;  %v2409_v0 = vld [vmem:[#allocation4 + $0x48] sm:$0xff]  ;;  %v2413_v6 = vld [vmem:[#allocation2 + $0x58] sm:$0xff] }
  0x44   :  { %v1807_v26 = vpop.eup %1806  ;;  %v219_v33 = vadd.f32 %v1805_v7, %v211_v1  ;;  %v300_v15 = vmul.f32 %v2386_v13, %v2389_v47  ;;  %v2411_v1 = vld [vmem:[#allocation4 + $0x58] sm:$0xff]  ;;  %v364_v3 = vmul.f32 %v2190_v25, %v2190_v25  ;;  %v365_v11 = vmul.f32 %v2203_v32, %v2203_v32  ;;  %v2431_v25 = vld [vmem:[#allocation4 + $0x60] sm:$0xff] }
  0x45   :  { %v1809_v51 = vpop.eup %1808  ;;  %v220_v56 = vadd.f32 %v1807_v26, %v212_v9  ;;  %v166_v9 = vld [vmem:[#allocation14] sm:$0xff]  ;;  %v167_v26 = vld [vmem:[#allocation14 + $0x8] sm:$0xff]  ;;  %v2422_v28 = vadd.f32 %v299_v61, %v284_v39  ;;  %vm449_vm4 = vcmp.gt.f32.partialorder %v2395_v50, %v2393_v49  ;;  %v320_v20 = vsel %vm2401_vm3, 0.0, %v2062_v45  ;;  %1744 = vmatmul.msk.f32.gmra.mxu3 %vm156_vm0, %v2338_v42 }
  0x46   :  { %v1811_v36 = vpop.eup %1810  ;;  %v227_v7 = vadd.f32 %v1809_v51, %v219_v33  ;;  %v2424_v38 = vadd.f32 %v300_v15, %v285_v58  ;;  %v366_v33 = vadd.f32 %v364_v3, %v362_v48  ;;  %v2433_v51 = vld [vmem:[#allocation4 + $0x68] sm:$0xff]  ;;  %vm450_vm5 = vcmp.gt.f32.partialorder %v2411_v1, %v2409_v0 }
  0x47   :  { %1721 = vmatmul.msk.f32.gmra.mxu0 %vm156_vm0, %v696_v31  ;;  %v228_v18 = vadd.f32 %v1811_v36, %v220_v56  ;;  %3246 = vst [vmem:[#allocation26_spill] sm:$0xff] %v2422_v28  ;;  %1729 = vmatmul.msk.f32.gmra.mxu1 %vm156_vm0, %v696_v31  ;;  %v321_v32 = vmul.f32 %v2422_v28, %v166_v9  ;;  %v2444_v56 = vld [vmem:[#allocation4 + $0x70] sm:$0xff]  ;;  %v451_v31 = vsel %vm449_vm4, 1, %v2061_v40  ;;  %v452_v5 = vsel %vm450_vm5, 1, %v2061_v40 }
  0x48   :  { %3247 = vst [vmem:[#allocation27_spill] sm:$0xff] %v2424_v38  ;;  %1812 = vlog2.f32 %v227_v7  ;;  %v322_v39 = vmul.f32 %v2424_v38, %v167_v26  ;;  %v367_v48 = vadd.f32 %v365_v11, %v363_v21  ;;  %v454_v21 = vsel %vm450_vm5, %v2411_v1, %v2409_v0 }
  0x49   :  { %1737 = vmatmul.msk.f32.gmra.mxu2 %vm156_vm0, %v2413_v6  ;;  %1814 = vlog2.f32 %v228_v18  ;;  %v453_v18 = vsel %vm449_vm4, %v2395_v50, %v2393_v49  ;;  %v323_v58 = vmul.f32 %v321_v32, %v2341_v46  ;;  %vm456_vm7 = vcmp.gt.f32.partialorder %v2433_v51, %v454_v21 }
  0x4a   :  { %v324_v61 = vmul.f32 %v322_v39, %v320_v20  ;;  %vm455_vm6 = vcmp.gt.f32.partialorder %v2431_v25, %v453_v18  ;;  %v460_v40 = vsel %vm456_vm7, %v2433_v51, %v454_v21  ;;  %v458_v26 = vsel %vm456_vm7, 2, %v452_v5 }
  0x4b   :  { %v459_v15 = vsel %vm455_vm6, %v2431_v25, %v453_v18  ;;  %v368_v36 = vmul.f32 %v366_v33, %v323_v58  ;;  %vm462_vm9 = vcmp.gt.f32.partialorder %v2446_v57, %v460_v40  ;;  %325 = vst.msk [vmem:[#allocation3] sm:$0xff] %vm156_vm0, %v323_v58  ;;  %v457_v46 = vsel %vm455_vm6, 2, %v451_v31 }
  0x4c   :  { %326 = vst.msk [vmem:[#allocation3 + $0x8] sm:$0xff] %vm156_vm0, %v324_v61  ;;  %v369_v7 = vmul.f32 %v367_v48, %v324_v61  ;;  %vm461_vm8 = vcmp.gt.f32.partialorder %v2444_v56, %v459_v15  ;;  %v2477_v11 = vsel %vm462_vm9, %v2446_v57, %v460_v40  ;;  %vm521_vm10 = vcmp.eq.s32.totalorder %v2166_v14, 1 }
  0x4d   :  { %v2472_v3 = vsel %vm461_vm8, %v2444_v56, %v459_v15  ;;  %v370_v32 = vsel %vm156_vm0, %v368_v36, 0.0  ;;  %v468_v18 = vsub.f32 %v2409_v0, %v2477_v11  ;;  %v476_v36 = vsub.f32 %v2411_v1, %v2477_v11  ;;  %1745 = vmatmul.msk.f32.gmra.mxu3 %vm156_vm0, %v2413_v6 }
  0x4e   :  { %v1813_v9 = vpop.eup %1812  ;;  %v371_v39 = vsel %vm156_vm0, %v369_v7, 0.0  ;;  %v467_v48 = vsub.f32 %v2393_v49, %v2472_v3  ;;  %v475_v21 = vsub.f32 %v2395_v50, %v2472_v3  ;;  %v483_v7 = vsub.f32 %v2431_v25, %v2472_v3 }
  0x4f   :  { %v1815_v20 = vpop.eup %1814  ;;  %v230_v33 = vmul.f32 0.6931472, %v1813_v9  ;;  %v372_v5 = vadd.f32 %v371_v39, %v370_v32  ;;  %v484_v39 = vsub.f32 %v2433_v51, %v2477_v11  ;;  %vm522_vm11 = vcmp.eq.s32.totalorder %v2172_v17, 1 }
  0x50   :  { %v232_v31 = vmul.f32 0.6931472, %v1815_v20  ;;  %v469_v61 = vmul.f32 1.442695, %v467_v48  ;;  %v471_v20 = vmul.f32 1.442695, %v468_v18  ;;  %v491_v18 = vsub.f32 %v2444_v56, %v2472_v3 }
  0x51   :  { %v2491_v58 = vadd.f32 %v230_v33, %v2268_v53  ;;  %373 = vadd.xlane.f32.xlu0 %v372_v5  ;;  %v477_v32 = vmul.f32 1.442695, %v475_v21  ;;  %vm537_vm12 = vcmp.eq.s32.totalorder %v2166_v14, 2  ;;  %v2514_v48 = vsel %vm461_vm8, 3, %v457_v46 }
  0x52   :  { %v2498_v9 = vadd.f32 %v232_v31, %v2271_v54  ;;  %1816 = vpow2.f32 %v469_v61  ;;  %vm538_vm13 = vcmp.eq.s32.totalorder %v2172_v17, 2  ;;  %v479_v31 = vmul.f32 1.442695, %v476_v36 }
  0x53   :  { %v241_v53 = vsub.f32 %v2184_v23, %v2491_v58  ;;  %v258_v42 = vsub.f32 %v2197_v29, %v2491_v58  ;;  %1818 = vpow2.f32 %v471_v20  ;;  %v2521_v29 = vsel %vm462_vm9, 3, %v458_v26 }
  0x54   :  { %v242_v54 = vsub.f32 %v2186_v24, %v2498_v9  ;;  %v259_v33 = vsub.f32 %v2199_v30, %v2498_v9  ;;  %1820 = vpow2.f32 %v477_v32  ;;  %v485_v15 = vmul.f32 1.442695, %v483_v7 }
  0x55   :  { %v2524_v24 = vmul.f32 %v2303_v4, %v241_v53  ;;  %v2527_v30 = vmul.f32 %v2320_v16, %v258_v42  ;;  %v487_v46 = vmul.f32 1.442695, %v484_v39  ;;  %1822 = vpow2.f32 %v479_v31 }
  0x56   :  { %v2530_v5 = vmul.f32 %v2310_v8, %v242_v54  ;;  %v492_v40 = vsub.f32 %v2446_v57, %v2477_v11  ;;  %v2537_v26 = vmul.f32 %v2324_v37, %v259_v33  ;;  %1824 = vpow2.f32 %v485_v15 }
  0x57   :  { %vm505_vm14 = vcmp.eq.s32.totalorder %v2166_v14, 0  ;;  %vm506_vm15 = vcmp.eq.s32.totalorder %v2172_v17, 0  ;;  %1826 = vpow2.f32 %v487_v46  ;;  %v493_v8 = vmul.f32 1.442695, %v491_v18 }
  0x58   :  { %v1817_v4 = vpop.eup %1816  ;;  %v495_v16 = vmul.f32 1.442695, %v492_v40  ;;  %v2546_v21 = vsel %vm505_vm14, 1.0, %v2060_v2  ;;  %v2551_v37 = vsel %vm506_vm15, 1.0, %v2060_v2  ;;  %v2556_v36 = vsel %vm521_vm10, 1.0, %v2060_v2 }
  0x59   :  { %v1819_v61 = vpop.eup %1818  ;;  %v2561_v6 = vsel %vm522_vm11, 1.0, %v2060_v2  ;;  %vm581_vm1 = vcmp.eq.s32.totalorder %v2514_v48, 1  ;;  %1828 = vpow2.f32 %v493_v8  ;;  %vm582_vm2 = vcmp.eq.s32.totalorder %v2521_v29, 1 }
  0x5a   :  { %v1821_v7 = vpop.eup %1820  ;;  %v3239_v20 = vcvt.s32.f32 %v2514_v48  ;;  %v3238_v32 = vcvt.s32.f32 %v2521_v29  ;;  %1830 = vpow2.f32 %v495_v16  ;;  %v517_v53 = vmul.f32 %v2546_v21, %v2336_v41  ;;  %vm2593_vm3 = vmand %vm505_vm14, %vm581_vm1 }
  0x5b   :  { %v481_v39 = vadd.f32 %v1821_v7, %v1817_v4  ;;  %v518_v42 = vmul.f32 %v2551_v37, %v2336_v41  ;;  %v1823_v54 = vpop.eup %1822  ;;  %v533_v15 = vmul.f32 %v2556_v36, %v2352_v55  ;;  %v534_v46 = vmul.f32 %v2561_v6, %v2352_v55  ;;  %vm2613_vm4 = vmand %vm506_vm15, %vm582_vm2 }
  0x5c   :  { %v667_v33 = vsel %vm156_vm0, %v3239_v20, 0.0  ;;  %v668_v31 = vsel %vm156_vm0, %v3238_v32, 0.0  ;;  %v1825_v18 = vpop.eup %1824  ;;  %v482_v40 = vadd.f32 %v1823_v54, %v1819_v61  ;;  %v383_v41 = vmul.f32 %v347_v27, %v345_v10 }
  0x5d   :  { %v669_v4 = vadd.f32 %v668_v31, %v667_v33  ;;  %v3248_v8 = vcvt.s32.f32 %v2286_v60  ;;  %v3249_v16 = vcvt.s32.f32 %v2182_v22  ;;  %v1827_v23 = vpop.eup %1826  ;;  %v489_v32 = vadd.f32 %v1825_v18, %v481_v39  ;;  %v595_v39 = vld [vmem:[#allocation10 + $0x20] sm:$0xff]  ;;  %v596_v31 = vld [vmem:[#allocation10 + $0x28] sm:$0xff] }
  0x5e   :  { %v535_v61 = vadd.f32 %v533_v15, %v517_v53  ;;  %v536_v52 = vadd.f32 %v534_v46, %v518_v42  ;;  %v2600_v19 = vsel %vm537_vm12, 1.0, %v2060_v2  ;;  %v490_v27 = vadd.f32 %v1827_v23, %v482_v40  ;;  %v598_v15 = vld [vmem:[#allocation11 + $0x20] sm:$0xff] }
  0x5f   :  { %v384_v7 = vmul.f32 %v3249_v16, %v3248_v8  ;;  %670 = vadd.xlane.f32.xlu2 %v669_v4  ;;  %v385_v22 = vsel %vm156_vm0, %v383_v41, 0.0  ;;  %v2607_v10 = vsel %vm538_vm13, 1.0, %v2060_v2  ;;  %v1829_v54 = vpop.eup %1828  ;;  %v549_v42 = vmul.f32 %v2600_v19, %v2374_v63  ;;  %v599_v41 = vld [vmem:[#allocation11 + $0x28] sm:$0xff]  ;;  %v603_v8 = vld [vmem:[#allocation10 + $0x30] sm:$0xff] }
  0x60   :  { %v550_v33 = vmul.f32 %v2607_v10, %v2374_v63  ;;  %vm553_vm5 = vcmp.eq.s32.totalorder %v2166_v14, 3  ;;  %v1831_v46 = vpop.eup %1830  ;;  %v497_v18 = vadd.f32 %v1829_v54, %v489_v32  ;;  %vm554_vm6 = vcmp.eq.s32.totalorder %v2172_v17, 3  ;;  %v606_v16 = vld [vmem:[#allocation11 + $0x30] sm:$0xff]  ;;  %v604_v32 = vld [vmem:[#allocation10 + $0x38] sm:$0xff] }
  0x61   :  { %v386_v60 = vsel %vm156_vm0, %v384_v7, 0.0  ;;  %v2624_v40 = vsel %vm553_vm5, 1.0, %v2060_v2  ;;  %v585_v4 = vsel %vm2593_vm3, 0.0, %v2062_v45  ;;  %v498_v7 = vadd.f32 %v1831_v46, %v490_v27  ;;  %v607_v54 = vld [vmem:[#allocation11 + $0x38] sm:$0xff]  ;;  %v435_v27 = vld [vmem:[#allocation14 + $0x10] sm:$0xff] }
  0x62   :  { %v387_v23 = vadd.f32 %v386_v60, %v385_v22  ;;  %v551_v63 = vadd.f32 %v549_v42, %v535_v61  ;;  %v552_v22 = vadd.f32 %v550_v33, %v536_v52  ;;  %v2630_v60 = vsel %vm554_vm6, 1.0, %v2060_v2  ;;  %v436_v61 = vld [vmem:[#allocation14 + $0x18] sm:$0xff] }
  0x63   :  { %1832 = vlog2.f32 %v497_v18  ;;  %v565_v20 = vmul.f32 %v2624_v40, %v2389_v47  ;;  %v566_v55 = vmul.f32 %v2630_v60, %v2389_v47  ;;  %v586_v38 = vsel %vm2613_vm4, 0.0, %v2062_v45 }
  0x64   :  { %388 = vadd.xlane.f32.xlu1 %v387_v23  ;;  %1834 = vlog2.f32 %v498_v7  ;;  %v600_v52 = vsub.f32 %v595_v39, %v598_v15  ;;  %v601_v23 = vsub.f32 %v596_v31, %v599_v41  ;;  %v608_v2 = vsub.f32 %v603_v8, %v606_v16  ;;  %v433_v41 = vld [vmem:[#allocation13 + $0x18] sm:$0xff] }
  0x65   :  { %v2639_v42 = vadd.f32 %v565_v20, %v551_v63  ;;  %v2641_v33 = vadd.f32 %v566_v55, %v552_v22  ;;  %v609_v46 = vsub.f32 %v604_v32, %v607_v54  ;;  %v3254_v18 = vcvt.s32.f32 %v2514_v48 }
  0x66   :  { %v3255_v28 = vcvt.s32.f32 %v2166_v14  ;;  %610 = vst.msk [vmem:[#allocation2 + $0x28] sm:$0xff] %vm156_vm0, %v600_v52  ;;  %v631_v53 = vmul.f32 %v600_v52, %v600_v52  ;;  %v632_v45 = vmul.f32 %v601_v23, %v601_v23  ;;  %v633_v7 = vmul.f32 %v608_v2, %v608_v2 }
  0x67   :  { %v3256_v13 = vcvt.s32.f32 %v2521_v29  ;;  %v3257_v39 = vcvt.s32.f32 %v2172_v17  ;;  %v587_v20 = vmul.f32 %v2639_v42, %v435_v27  ;;  %v588_v15 = vmul.f32 %v2641_v33, %v436_v61  ;;  %611 = vst.msk [vmem:[#allocation2 + $0x30] sm:$0xff] %vm156_vm0, %v601_v23 }
  0x68   :  { %v652_v47 = vmul.f32 %v3255_v28, %v3254_v18  ;;  %v634_v48 = vmul.f32 %v609_v46, %v609_v46  ;;  %v432_v28 = vld [vmem:[#allocation13 + $0x10] sm:$0xff]  ;;  %v262_v8 = vadd.f32 %v2527_v30, %v2524_v24  ;;  %v276_v29 = vsub.f32 %v2210_v35, %v2498_v9  ;;  %612 = vst.msk [vmem:[#allocation2 + $0x68] sm:$0xff] %vm156_vm0, %v608_v2 }
  0x69   :  { %v653_v31 = vmul.f32 %v3257_v39, %v3256_v13  ;;  %v635_v17 = vadd.f32 %v633_v7, %v631_v53  ;;  %v1833_v16 = vpop.eup %1832  ;;  %v589_v63 = vmul.f32 %v587_v20, %v585_v4  ;;  %v590_v22 = vmul.f32 %v588_v15, %v586_v38  ;;  %613 = vst.msk [vmem:[#allocation2 + $0x70] sm:$0xff] %vm156_vm0, %v609_v46 }
  0x6a   :  { %v654_v14 = vsel %vm156_vm0, %v652_v47, 0.0  ;;  %v636_v32 = vadd.f32 %v634_v48, %v632_v45  ;;  %v1835_v55 = vpop.eup %1834  ;;  %v263_v27 = vadd.f32 %v2537_v26, %v2530_v5  ;;  %v500_v24 = vmul.f32 0.6931472, %v1833_v16 }
  0x6b   :  { %v655_v13 = vsel %vm156_vm0, %v653_v31, 0.0  ;;  %v573_v30 = vmul.f32 0.09531018, %v432_v28  ;;  %v574_v61 = vmul.f32 0.09531018, %v433_v41  ;;  %592 = vst.msk [vmem:[#allocation3 + $0x10] sm:$0xff] %vm156_vm0, %v589_v63  ;;  %v637_v52 = vmul.f32 %v635_v17, %v589_v63 }
  0x6c   :  { %v656_v54 = vadd.f32 %v655_v13, %v654_v14  ;;  %v502_v35 = vmul.f32 0.6931472, %v1835_v55  ;;  %v638_v23 = vmul.f32 %v636_v32, %v590_v22  ;;  %v569_v4 = vsub.f32 0.0, %v2639_v42  ;;  %593 = vst.msk [vmem:[#allocation3 + $0x18] sm:$0xff] %vm156_vm0, %v590_v22 }
  0x6d   :  { %v503_v38 = vadd.f32 %v500_v24, %v2472_v3  ;;  %v575_v2 = vmul.f32 1.442695, %v573_v30  ;;  %v3258_v46 = vsub.f32 %v2208_v34, %v2491_v58  ;;  %v278_v26 = vmul.f32 %v2371_v62, %v276_v29 }
  0x6e   :  { %657 = vadd.xlane.f32.xlu1 %v656_v54  ;;  %v504_v18 = vadd.f32 %v502_v35, %v2477_v11  ;;  %v639_v47 = vsel %vm156_vm0, %v637_v52, 0.0  ;;  %v640_v53 = vsel %vm156_vm0, %v638_v23, 0.0  ;;  %v577_v45 = vmul.f32 1.442695, %v574_v61  ;;  %v3261_v54 = vld [vmem:[#allocation27_spill] sm:$0xff] }
  0x6f   :  { %v277_v5 = vmul.f32 %v2362_v59, %v3258_v46  ;;  %v511_v42 = vsub.f32 %v2393_v49, %v503_v38  ;;  %v641_v3 = vadd.f32 %v640_v53, %v639_v47  ;;  %v527_v7 = vsub.f32 %v2395_v50, %v503_v38  ;;  %v705_v47 = vld [vmem:[#allocation2 + $0x60] sm:$0xff] }
  0x70   :  { %v543_v39 = vsub.f32 %v2431_v25, %v503_v38  ;;  %v512_v34 = vsub.f32 %v2409_v0, %v504_v18  ;;  %v528_v59 = vsub.f32 %v2411_v1, %v504_v18  ;;  %v544_v62 = vsub.f32 %v2433_v51, %v504_v18  ;;  %v164_v1 = vld [vmem:[#allocation13] sm:$0xff]  ;;  %1738 = vmatmul.msk.f32.gmra.mxu2 %vm156_vm0, %v705_v47 }
  0x71   :  { %v559_v11 = vsub.f32 %v2444_v56, %v503_v38  ;;  %v513_v31 = vmul.f32 %v2546_v21, %v511_v42  ;;  %642 = vadd.xlane.f32.xlu0 %v641_v3  ;;  %v529_v20 = vmul.f32 %v2556_v36, %v527_v7  ;;  %v560_v15 = vsub.f32 %v2446_v57, %v504_v18  ;;  %v165_v21 = vld [vmem:[#allocation13 + $0x8] sm:$0xff]  ;;  %v697_v53 = vld [vmem:[#allocation2 + $0x20] sm:$0xff]  ;;  %v707_v3 = vld [vmem:[#allocation2 + $0x70] sm:$0xff] }
  0x72   :  { %v545_v49 = vmul.f32 %v2600_v19, %v543_v39  ;;  %v514_v50 = vmul.f32 %v2551_v37, %v512_v34  ;;  %v530_v25 = vmul.f32 %v2561_v6, %v528_v59  ;;  %v546_v0 = vmul.f32 %v2607_v10, %v544_v62  ;;  %1746 = vmatmul.msk.f32.gmra.mxu3 %vm156_vm0, %v705_v47  ;;  %v698_v42 = vld [vmem:[#allocation2 + $0x28] sm:$0xff]  ;;  %v699_v7 = vld [vmem:[#allocation2 + $0x30] sm:$0xff]  ;;  %v700_v59 = vld [vmem:[#allocation2 + $0x38] sm:$0xff] }
  0x73   :  { %v279_v48 = vadd.f32 %v277_v5, %v262_v8  ;;  %v531_v51 = vadd.f32 %v529_v20, %v513_v31  ;;  %v561_v56 = vmul.f32 %v2624_v40, %v559_v11  ;;  %1836 = vpow2.f32 %v575_v2  ;;  %v3259_v8 = vld [vmem:[#allocation25_spill] sm:$0xff]  ;;  %1722 = vmatmul.msk.f32.gmra.mxu0 %vm156_vm0, %v697_v53  ;;  %1730 = vmatmul.msk.f32.gmra.mxu1 %vm156_vm0, %v697_v53  ;;  %v708_v62 = vld [vmem:[#allocation2 + $0x78] sm:$0xff] }
  0x74   :  { %v292_v36 = vsub.f32 %v2236_v43, %v2491_v58  ;;  %v532_v14 = vadd.f32 %v530_v25, %v514_v50  ;;  %v562_v19 = vmul.f32 %v2630_v60, %v560_v15  ;;  %1838 = vpow2.f32 %v577_v45  ;;  %v3260_v60 = vld [vmem:[#allocation26_spill] sm:$0xff] }
  0x75   :  { %v293_v57 = vsub.f32 %v2238_v44, %v2498_v9  ;;  %v547_v37 = vadd.f32 %v545_v49, %v531_v51  ;;  %v280_v6 = vadd.f32 %v278_v26, %v263_v27  ;;  %v307_v28 = vmul.f32 0.09531018, %v164_v1  ;;  %v706_v45 = vld [vmem:[#allocation2 + $0x68] sm:$0xff] }
  0x76   :  { %v294_v10 = vmul.f32 %v2383_v12, %v292_v36  ;;  %v548_v41 = vadd.f32 %v546_v0, %v532_v14  ;;  %v570_v40 = vsub.f32 0.0, %v2641_v33  ;;  %v308_v17 = vmul.f32 0.09531018, %v165_v21 }
  0x77   :  { %v295_v29 = vmul.f32 %v3259_v8, %v293_v57  ;;  %v563_v13 = vadd.f32 %v561_v56, %v547_v37  ;;  %v309_v43 = vmul.f32 1.442695, %v307_v28  ;;  %v303_v63 = vsub.f32 0.0, %v3260_v60 }
  0x78   :  { %v564_v58 = vadd.f32 %v562_v19, %v548_v41  ;;  %v296_v16 = vadd.f32 %v294_v10, %v279_v48  ;;  %v311_v22 = vmul.f32 1.442695, %v308_v17  ;;  %v304_v55 = vsub.f32 0.0, %v3261_v54  ;;  %1739 = vmatmul.msk.f32.gmra.mxu2 %vm156_vm0, %v706_v45 }
  0x79   :  { %v1837_v32 = vpop.eup %1836  ;;  %v571_v44 = vmul.f32 %v569_v4, %v563_v13  ;;  %v297_v9 = vadd.f32 %v295_v29, %v280_v6  ;;  %1840 = vpow2.f32 %v309_v43  ;;  %vm929_vm7 = vcmask 1046528  }
  0x7a   :  { %v1839_v12 = vpop.eup %1838  ;;  %v572_v27 = vmul.f32 %v570_v40, %v564_v58  ;;  %1842 = vpow2.f32 %v311_v22  ;;  %v305_v30 = vmul.f32 %v303_v63, %v296_v16  ;;  %1747 = vmatmul.msk.f32.gmra.mxu3 %vm156_vm0, %v706_v45  ;;  %vm967_vm8 = vcmask 1045504  }
  0x7b   :  { %v579_v33 = vmul.f32 %v1837_v32, %v571_v44  ;;  %v306_v35 = vmul.f32 %v304_v55, %v297_v9  ;;  %1723 = vmatmul.msk.f32.gmra.mxu0 %vm156_vm0, %v698_v42  ;;  %1731 = vmatmul.msk.f32.gmra.mxu1 %vm156_vm0, %v698_v42  ;;  %vm1002_vm9 = vcmask 1044480   ;;  %vm1037_vm10 = vcmask 1043456  }
  0x7c   :  { %v580_v24 = vmul.f32 %v1839_v12, %v572_v27  ;;  %vm1072_vm11 = vcmask 1042432   ;;  %vm1104_vm12 = vcmask 1041408   ;;  %vm1140_vm13 = vcmask 1040384  }
  0x7d   :  { %v618_v61 = vsel %vm156_vm0, %v579_v33, 0.0 }
  0x7e   :  { %v619_v52 = vsel %vm156_vm0, %v580_v24, 0.0 }
  0x7f   :  { %v1841_v23 = vpop.eup %1840  ;;  %v620_v38 = vadd.f32 %v619_v52, %v618_v61 }
  0x80   :  { %v1843_v2 = vpop.eup %1842  ;;  %v313_v46 = vmul.f32 %v1841_v23, %v305_v30  ;;  %1740 = vmatmul.msk.f32.gmra.mxu2 %vm156_vm0, %v707_v3 }
  0x81   :  { %621 = vadd.xlane.f32.xlu2 %v620_v38  ;;  %v314_v4 = vmul.f32 %v1843_v2, %v306_v35 }
  0x82   :  { %v349_v5 = vsel %vm156_vm0, %v313_v46, 0.0  ;;  %1748 = vmatmul.msk.f32.gmra.mxu3 %vm156_vm0, %v707_v3 }
  0x83   :  { %v350_v26 = vsel %vm156_vm0, %v314_v4, 0.0  ;;  %1724 = vmatmul.msk.f32.gmra.mxu0 %vm156_vm0, %v699_v7  ;;  %1732 = vmatmul.msk.f32.gmra.mxu1 %vm156_vm0, %v699_v7 }
  0x84   :  { %v351_v18 = vadd.f32 %v350_v26, %v349_v5 }
  0x86   :  { %352 = vadd.xlane.f32.xlu0 %v351_v18 }
  0x88   :  { %1741 = vmatmul.msk.f32.gmra.mxu2 %vm156_vm0, %v708_v62 }
  0x8a   :  { %1749 = vmatmul.msk.f32.gmra.mxu3 %vm156_vm0, %v708_v62 }
  0x8b   :  { %1725 = vmatmul.msk.f32.gmra.mxu0 %vm156_vm0, %v700_v59  ;;  %1733 = vmatmul.msk.f32.gmra.mxu1 %vm156_vm0, %v700_v59 }
  0xa4   :  { %v2772_v16 = vpop.xlane.xlu0 %683  ;;  %v415_v44 = vpop.xlane.xlu2 %414 }
  0xa5   :  { %v416_v5 = vrot.slane %v415_v44, 4 }
  0xac   :  { %v2718_v39 = vpop.f32.mrf.mxu0  ;;  %v795_v34 = vpop.f32.mrf.mxu1 }
  0xad   :  { %v930_v20 = vrot.slane %v2718_v39, 1  ;;  %v968_v6 = vrot.slane %v2718_v39, 2  ;;  %v1003_v29 = vrot.slane %v2718_v39, 3  ;;  %v1038_v60 = vrot.slane %v2718_v39, 4 }
  0xb3   :  { %v2755_v28 = vpop.f32.mrf.mxu2  ;;  %v402_v22 = vpop.xlane.xlu1 %401 }
  0xb4   :  { %v2724_v11 = vpop.f32.mrf.mxu0  ;;  %v403_v4 = vrot.slane %v402_v22, 4 }
  0xb5   :  { %v1073_v31 = vrot.slane %v2724_v11, 5  ;;  %v931_v49 = vrot.slane %v2724_v11, 1  ;;  %v1105_v25 = vrot.slane %v2724_v11, 6  ;;  %v969_v1 = vrot.slane %v2724_v11, 2 }
  0xb6   :  { %v1141_v14 = vrot.slane %v2724_v11, 7  ;;  %v1004_v19 = vrot.slane %v2724_v11, 3  ;;  %v1039_v10 = vrot.slane %v2724_v11, 4  ;;  %v404_v34 = vadd.f32 %v403_v4, %v402_v22 }
  0xb7   :  { %1076 = vrot.lane.b32.xlu2 %v1073_v31, %s2063_s20  ;;  %v932_v15 = vsel %vm929_vm7, %v930_v20, %v931_v49  ;;  %v970_v41 = vsel %vm967_vm8, %v968_v6, %v969_v1  ;;  %v417_v20 = vadd.f32 %v416_v5, %v415_v44 }
  0xb8   :  { %935 = vrot.lane.b32.xlu1 %v932_v15, %s2064_s21  ;;  %v904_v36 = vpop.f32.mrf.mxu3  ;;  %v1005_v17 = vsel %vm1002_vm9, %v1003_v29, %v1004_v19  ;;  %v1040_v63 = vsel %vm1037_vm10, %v1038_v60, %v1039_v10 }
  0xb9   :  { %v405_v36 = vrot.slane %v404_v34, 2 }
  0xbc   :  { %v2732_v50 = vpop.f32.mrf.mxu0  ;;  %v2768_v43 = vpop.f32.mrf.mxu2 }
  0xbd   :  { %v933_v0 = vrot.slane %v2732_v50, 1  ;;  %v971_v48 = vrot.slane %v2732_v50, 2  ;;  %v1006_v21 = vrot.slane %v2732_v50, 3  ;;  %v1041_v37 = vrot.slane %v2732_v50, 4 }
  0xbe   :  { %v1074_v8 = vrot.slane %v2732_v50, 5  ;;  %v1106_v58 = vrot.slane %v2732_v50, 6  ;;  %v1142_v54 = vrot.slane %v2732_v50, 7  ;;  %v1088_v55 = vrot.slane %v2768_v43, 5 }
  0xbf   :  { %1110 = vrot.lane.b32.xlu2 %v1105_v25, %s2065_s22  ;;  %939 = vrot.lane.b32.xlu0 %v933_v0, %s2064_s21  ;;  %v972_v51 = vsel %vm967_vm8, %v969_v1, %v971_v48  ;;  %v2743_v56 = vsel %vm929_vm7, %v931_v49, %v933_v0  ;;  %v1007_v57 = vsel %vm1002_vm9, %v1004_v19, %v1006_v21  ;;  %v1123_v61 = vrot.slane %v2768_v43, 6  ;;  %v2809_v49 = vpop.f32.mrf.mxu1 }
  0xc0   :  { %975 = vrot.lane.b32.xlu1 %v972_v51, %s2066_s23  ;;  %v1042_v40 = vsel %vm1037_vm10, %v1039_v10, %v1041_v37  ;;  %v1075_v13 = vsel %vm1072_vm11, %v1073_v31, %v1074_v8  ;;  %v1107_v32 = vsel %vm1104_vm12, %v1105_v25, %v1106_v58  ;;  %v1143_v33 = vsel %vm1140_vm13, %v1141_v14, %v1142_v54  ;;  %v2806_v7 = vpop.f32.mrf.mxu3 }
  0xc1   :  { %v951_v52 = vrot.slane %v2768_v43, 1  ;;  %v1158_v45 = vrot.slane %v2768_v43, 7  ;;  %v986_v42 = vrot.slane %v2768_v43, 2  ;;  %v685_v25 = vrot.slane %v2772_v16, 4 }
  0xc2   :  { %v950_v10 = vrot.slane %v2755_v28, 1  ;;  %v1021_v22 = vrot.slane %v2768_v43, 3 }
  0xc4   :  { %v2782_v9 = vpop.f32.mrf.mxu2  ;;  %v374_v27 = vpop.xlane.xlu0 %373 }
  0xc5   :  { %v953_v12 = vrot.slane %v2782_v9, 1  ;;  %v988_v35 = vrot.slane %v2782_v9, 2  ;;  %v375_v23 = vrot.slane %v374_v27, 4  ;;  %v1023_v59 = vrot.slane %v2782_v9, 3 }
  0xc7   :  { %1146 = vrot.lane.b32.xlu2 %v1141_v14, %s2058_s3  ;;  %977 = vrot.lane.b32.xlu0 %v971_v48, %s2066_s23  ;;  %v954_v38 = vsel %vm929_vm7, %v951_v52, %v953_v12  ;;  %v376_v18 = vadd.f32 %v375_v23, %v374_v27  ;;  %v989_v1 = vsel %vm967_vm8, %v986_v42, %v988_v35 }
  0xc8   :  { %1010 = vrot.lane.b32.xlu1 %v1007_v57, %s2067_s5  ;;  %v418_v57 = vrot.slane %v417_v20, 2  ;;  %v952_v27 = vsel %vm929_vm7, %v950_v10, %v951_v52 }
  0xc9   :  { %v377_v0 = vrot.slane %v376_v18, 2 }
  0xcf   :  { %973 = vrot.lane.b32.xlu2 %v970_v41, %s2066_s23  ;;  %1012 = vrot.lane.b32.xlu0 %v1006_v21, %s2067_s5  ;;  %v686_v41 = vadd.f32 %v685_v25, %v2772_v16  ;;  %v1024_v16 = vsel %vm1002_vm9, %v1021_v22, %v1023_v59  ;;  %v1056_v25 = vrot.slane %v2768_v43, 4 }
  0xd0   :  { %1045 = vrot.lane.b32.xlu1 %v1042_v40, %s2068_s24 }
  0xd2   :  { %v671_v30 = vpop.xlane.xlu2 %670 }
  0xd3   :  { %v672_v15 = vrot.slane %v671_v30, 4 }
  0xd7   :  { %1008 = vrot.lane.b32.xlu2 %v1005_v17, %s2067_s5  ;;  %1047 = vrot.lane.b32.xlu0 %v1041_v37, %s2068_s24  ;;  %v389_v24 = vpop.xlane.xlu1 %388  ;;  %v673_v37 = vadd.f32 %v672_v15, %v671_v30  ;;  %v687_v30 = vrot.slane %v686_v41, 2  ;;  %v1089_v15 = vrot.slane %v2782_v9, 5 }
  0xd8   :  { %1078 = vrot.lane.b32.xlu1 %v1075_v13, %s2063_s20  ;;  %v390_v46 = vrot.slane %v389_v24, 4 }
  0xd9   :  { %v674_v44 = vrot.slane %v673_v37, 2 }
  0xda   :  { %v391_v47 = vadd.f32 %v390_v46, %v389_v24  ;;  %v2825_v24 = vpop.f32.mrf.mxu3 }
  0xdc   :  { %v392_v51 = vrot.slane %v391_v47, 2 }
  0xde   :  { %v393_v13 = vadd.f32 %v392_v51, %v391_v47 }
  0xdf   :  { %1043 = vrot.lane.b32.xlu2 %v1040_v63, %s2068_s24  ;;  %1080 = vrot.lane.b32.xlu0 %v1074_v8, %s2063_s20  ;;  %v378_v8 = vadd.f32 %v377_v0, %v376_v18  ;;  %v1058_v63 = vrot.slane %v2782_v9, 4 }
  0xe0   :  { %1112 = vrot.lane.b32.xlu1 %v1107_v32, %s2065_s22  ;;  %v406_v32 = vadd.f32 %v405_v36, %v404_v34  ;;  %v394_v46 = vrot.slane %v393_v13, 1 }
  0xe1   :  { %v658_v26 = vpop.xlane.xlu1 %657  ;;  %v1059_v36 = vsel %vm1037_vm10, %v1056_v25, %v1058_v63 }
  0xe2   :  { %v659_v62 = vrot.slane %v658_v26, 4  ;;  %v407_v52 = vrot.slane %v406_v32, 1 }
  0xe4   :  { %v643_v2 = vpop.xlane.xlu0 %642  ;;  %v660_v14 = vadd.f32 %v659_v62, %v658_v26  ;;  %v985_v26 = vrot.slane %v2755_v28, 2  ;;  %v688_v62 = vadd.f32 %v687_v30, %v686_v41  ;;  %v408_v0 = vadd.f32 %v407_v52, %v406_v32 }
  0xe5   :  { %v644_v53 = vrot.slane %v643_v2, 4  ;;  %v1020_v41 = vrot.slane %v2755_v28, 3 }
  0xe6   :  { %v661_v60 = vrot.slane %v660_v14, 2 }
  0xe7   :  { %1091 = vrot.lane.b32.xlu2 %v1088_v55, %s2063_s20  ;;  %959 = vrot.lane.b32.xlu0 %v953_v12, %s2064_s21  ;;  %v645_v21 = vadd.f32 %v644_v53, %v643_v2  ;;  %v675_v53 = vadd.f32 %v674_v44, %v673_v37  ;;  %v2843_v37 = vpop.f32.mrf.mxu3  ;;  %v1055_v44 = vrot.slane %v2755_v28, 4 }
  0xe8   :  { %1148 = vrot.lane.b32.xlu1 %v1143_v33, %s2058_s3  ;;  %v419_v33 = vadd.f32 %v418_v57, %v417_v20  ;;  %v662_v5 = vadd.f32 %v661_v60, %v660_v14 }
  0xe9   :  { %v646_v29 = vrot.slane %v645_v21, 2 }
  0xea   :  { %v420_v47 = vrot.slane %v419_v33, 1 }
  0xeb   :  { %v647_v4 = vadd.f32 %v646_v29, %v645_v21  ;;  %v676_v21 = vrot.slane %v675_v53, 1  ;;  %v1022_v29 = vsel %vm1002_vm9, %v1020_v41, %v1021_v22  ;;  %v1124_v22 = vrot.slane %v2782_v9, 6 }
  0xec   :  { %v421_v51 = vadd.f32 %v420_v47, %v419_v33 }
  0xed   :  { %v648_v20 = vrot.slane %v647_v4, 1  ;;  %v677_v10 = vadd.f32 %v676_v21, %v675_v53 }
  0xef   :  { %1128 = vrot.lane.b32.xlu2 %v1123_v61, %s2065_s22  ;;  %994 = vrot.lane.b32.xlu0 %v988_v35, %s2066_s23  ;;  %v379_v35 = vrot.slane %v378_v8, 1  ;;  %v649_v57 = vadd.f32 %v648_v20, %v647_v4  ;;  %v872_v4 = vpop.f32.mrf.mxu2 }
  0xf0   :  { %957 = vrot.lane.b32.xlu1 %v954_v38, %s2064_s21  ;;  %v2830_v38 = vpop.f32.mrf.mxu1 }
  0xf4   :  { %v622_v3 = vpop.xlane.xlu2 %621 }
  0xf5   :  { %v623_v31 = vrot.slane %v622_v3, 4  ;;  %v915_v60 = vpop.f32.mrf.mxu3 }
  0xf6   :  { %v1241_v60 = vrot.slane %v2843_v37, 2 }
  0xf7   :  { %1163 = vrot.lane.b32.xlu2 %v1158_v45, %s2058_s3  ;;  %1029 = vrot.lane.b32.xlu0 %v1023_v59, %s2067_s5  ;;  %v624_v48 = vadd.f32 %v623_v31, %v622_v3  ;;  %v380_v3 = vadd.f32 %v379_v35, %v378_v8  ;;  %v395_v31 = vadd.f32 %v394_v46, %v393_v13  ;;  %v1159_v35 = vrot.slane %v2782_v9, 7 }
  0xf8   :  { %992 = vrot.lane.b32.xlu1 %v989_v1, %s2066_s23  ;;  %v663_v1 = vrot.slane %v662_v5, 1  ;;  %v1090_v13 = vsel %vm1072_vm11, %v1088_v55, %v1089_v15  ;;  %v1125_v55 = vsel %vm1104_vm12, %v1123_v61, %v1124_v22  ;;  %v1185_v46 = vrot.slane %v2830_v38, 1 }
  0xf9   :  { %v353_v19 = vpop.xlane.xlu0 %352  ;;  %v625_v40 = vrot.slane %v624_v48, 2 }
  0xfa   :  { %v354_v6 = vrot.slane %v353_v19, 4 }
  0xfb   :  { %v626_v23 = vadd.f32 %v625_v40, %v624_v48  ;;  %v987_v48 = vsel %vm967_vm8, %v985_v26, %v986_v42  ;;  %v664_v42 = vadd.f32 %v663_v1, %v662_v5  ;;  %v1126_v5 = vrot.slane %v872_v4, 6 }
  0xfc   :  { %v355_v17 = vadd.f32 %v354_v6, %v353_v19  ;;  %v689_v19 = vrot.slane %v688_v62, 1  ;;  %v2845_v6 = vpop.f32.mrf.mxu1  ;;  %v1204_v26 = vrot.slane %v2806_v7, 1 }
  0xfd   :  { %v627_v34 = vrot.slane %v626_v23, 1  ;;  %v1187_v8 = vrot.slane %v2845_v6, 1 }
  0xfe   :  { %v356_v12 = vrot.slane %v355_v17, 2  ;;  %v690_v40 = vadd.f32 %v689_v19, %v688_v62 }
  0xff   :  { %955 = vrot.lane.b32.xlu2 %v952_v27, %s2064_s21  ;;  %1064 = vrot.lane.b32.xlu0 %v1058_v63, %s2068_s24  ;;  %v628_v14 = vadd.f32 %v627_v34, %v626_v23  ;;  %v1057_v27 = vsel %vm1037_vm10, %v1055_v44, %v1056_v25  ;;  %v1161_v25 = vrot.slane %v872_v4, 7 }
 0x100   :  { %1027 = vrot.lane.b32.xlu1 %v1024_v16, %s2067_s5  ;;  %v357_v2 = vadd.f32 %v356_v12, %v355_v17  ;;  %v763_v17 = vpop.f32.mrf.mxu0 }
 0x101   :  { %v1108_v32 = vrot.slane %v763_v17, 6  ;;  %v1144_v16 = vrot.slane %v763_v17, 7 }
 0x102   :  { %v358_v18 = vrot.slane %v357_v2, 1 }
 0x103   :  { %v1109_v33 = vsel %vm1104_vm12, %v1106_v58, %v1108_v32  ;;  %v1145_v23 = vsel %vm1140_vm13, %v1142_v54, %v1144_v16  ;;  %v1160_v58 = vsel %vm1140_vm13, %v1158_v45, %v1159_v35  ;;  %v1207_v54 = vrot.slane %v2843_v37, 1 }
 0x104   :  { %v359_v59 = vadd.f32 %v358_v18, %v357_v2  ;;  %v806_v12 = vpop.f32.mrf.mxu1  ;;  %v1184_v2 = vrot.slane %v2809_v49, 1  ;;  %v1205_v18 = vrot.slane %v2825_v24, 1 }
 0x106   :  { %1750 = vpush %v359_v59  ;;  %v1186_v52 = vsel %vm929_vm7, %v1184_v2, %v1185_v46  ;;  %v1206_v62 = vsel %vm929_vm7, %v1204_v26, %v1205_v18  ;;  %v1127_v59 = vsel %vm1104_vm12, %v1124_v22, %v1126_v5 }
 0x107   :  { %990 = vrot.lane.b32.xlu2 %v987_v48, %s2066_s23  ;;  %1095 = vrot.lane.b32.xlu0 %v1089_v15, %s2063_s20  ;;  %1752 = vpush %v380_v3  ;;  %v2896_v3 = vpop.f32.mrf.mxu2 }
 0x108   :  { %1062 = vrot.lane.b32.xlu1 %v1059_v36, %s2068_s24  ;;  %1754 = vpush %v395_v31  ;;  %v1208_v31 = vsel %vm929_vm7, %v1205_v18, %v1207_v54  ;;  %v2909_v21 = vpop.f32.mrf.mxu0 }
 0x109   :  { %1756 = vpush %v408_v0  ;;  %v1222_v0 = vrot.slane %v2830_v38, 2 }
 0x10a   :  { %1758 = vpush %v421_v51  ;;  %v1224_v51 = vrot.slane %v2845_v6, 2 }
 0x10b   :  { %1760 = vpush %v628_v14  ;;  %v1162_v14 = vsel %vm1140_vm13, %v1159_v35, %v1161_v25 }
 0x10c   :  { %1762 = vpush %v649_v57  ;;  %v1225_v57 = vsel %vm967_vm8, %v1222_v0, %v1224_v51 }
 0x10d   :  { %1764 = vpush %v664_v42 }
 0x10e   :  { %1766 = vpush %v677_v10 }
 0x10f   :  { %1768 = vpush %v690_v40  ;;  %1025 = vrot.lane.b32.xlu2 %v1022_v29, %s2067_s5  ;;  %1193 = vrot.lane.b32.xlu0 %v1187_v8, %s2064_s21  ;;  %v2913_v19 = vpop.f32.mrf.mxu2  ;;  %v1238_v40 = vrot.slane %v2806_v7, 2 }
 0x110   :  { %1093 = vrot.lane.b32.xlu1 %v1090_v13, %s2063_s20  ;;  %v2932_v32 = vpop.f32.mrf.mxu0 }
 0x111   :  { %v2856_v63 = vpop.permute.xlu2 %1076 }
 0x117   :  { %1060 = vrot.lane.b32.xlu2 %v1057_v27, %s2068_s24  ;;  %1114 = vrot.lane.b32.xlu0 %v1109_v33, %s2065_s22  ;;  %v2940_v12 = vpop.f32.mrf.mxu2 }
 0x118   :  { %1130 = vrot.lane.b32.xlu1 %v1125_v55, %s2065_s22  ;;  %v1360_v35 = vrot.slane %v2940_v12, 2  ;;  %v1326_v25 = vrot.slane %v2940_v12, 1 }
 0x119   :  { %v2870_v30 = vpop.permute.xlu2 %1110 }
 0x11f   :  { %937 = vrot.lane.b32.xlu2 %v2743_v56, %s2064_s21  ;;  %1150 = vrot.lane.b32.xlu0 %v1145_v23, %s2058_s3  ;;  %v1188_v56 = vsel %vm929_vm7, %v1185_v46, %v1187_v8  ;;  %v1239_v8 = vrot.slane %v2825_v24, 2  ;;  %v1303_v23 = vrot.slane %v2909_v21, 1 }
 0x120   :  { %1165 = vrot.lane.b32.xlu1 %v1160_v58, %s2058_s3  ;;  %v1304_v58 = vrot.slane %v2932_v32, 1 }
 0x121   :  { %v2883_v61 = vpop.permute.xlu2 %1146  ;;  %v1240_v22 = vsel %vm967_vm8, %v1238_v40, %v1239_v8 }
 0x122   :  { %v1305_v2 = vsel %vm929_vm7, %v1303_v23, %v1304_v58  ;;  %v1357_v23 = vrot.slane %v2896_v3, 2 }
 0x127   :  { %1189 = vrot.lane.b32.xlu2 %v1186_v52, %s2064_s21  ;;  %1213 = vrot.lane.b32.xlu0 %v1207_v54, %s2064_s21 }
 0x128   :  { %1191 = vrot.lane.b32.xlu1 %v1188_v56, %s2064_s21  ;;  %v1408_v56 = vrot.slane %v2909_v21, 4 }
 0x129   :  { %v974_v45 = vpop.permute.xlu2 %973 }
 0x12a   :  { %v936_v47 = vpop.permute.xlu1 %935 }
 0x12b   :  { %v944_v53 = vadd.f32 %v936_v47, %v2718_v39  ;;  %v1221_v39 = vrot.slane %v2809_v49, 2 }
 0x12d   :  { %v982_v34 = vadd.f32 %v974_v45, %v944_v53  ;;  %v1223_v36 = vsel %vm967_vm8, %v1221_v39, %v1222_v0  ;;  %v1409_v45 = vrot.slane %v2932_v32, 4 }
 0x12f   :  { %1209 = vrot.lane.b32.xlu2 %v1206_v62, %s2064_s21  ;;  %1132 = vrot.lane.b32.xlu0 %v1127_v59, %s2065_s22  ;;  %v1410_v26 = vsel %vm1037_vm10, %v1408_v56, %v1409_v45 }
 0x130   :  { %1211 = vrot.lane.b32.xlu1 %v1208_v31, %s2064_s21  ;;  %v1426_v31 = vrot.slane %v2913_v19, 4 }
 0x131   :  { %v1009_v20 = vpop.permute.xlu2 %1008  ;;  %v940_v15 = vpop.permute.xlu0 %939 }
 0x132   :  { %v1017_v1 = vadd.f32 %v1009_v20, %v982_v34  ;;  %v2906_v48 = vpop.permute.xlu1 %975  ;;  %v946_v42 = vadd.f32 %v940_v15, %v2732_v50  ;;  %v1425_v34 = vrot.slane %v2896_v3, 4  ;;  %v1323_v20 = vrot.slane %v2896_v3, 1 }
 0x133   :  { %v1324_v15 = vrot.slane %v2913_v19, 1 }
 0x134   :  { %v1427_v39 = vsel %vm1037_vm10, %v1425_v34, %v1426_v31 }
 0x135   :  { %v1325_v0 = vsel %vm929_vm7, %v1323_v20, %v1324_v15  ;;  %v1374_v20 = vrot.slane %v2909_v21, 3 }
 0x137   :  { %1226 = vrot.lane.b32.xlu2 %v1223_v36, %s2066_s23  ;;  %1167 = vrot.lane.b32.xlu0 %v1162_v14, %s2058_s3  ;;  %s1751_s25 = spop %1750 }
 0x138   :  { %1228 = vrot.lane.b32.xlu1 %v1225_v57, %s2066_s23  ;;  %s1753_s26 = spop %1752  ;;  %v1340_v57 = vrot.slane %v2909_v21, 2 }
 0x139   :  { %v1044_v10 = vpop.permute.xlu2 %1043  ;;  %v978_v41 = vpop.permute.xlu0 %977  ;;  %s2920_s0 = spop %1754 }
 0x13a   :  { %v1052_v29 = vadd.f32 %v1044_v10, %v1017_v1  ;;  %v984_v17 = vadd.f32 %v978_v41, %v946_v42  ;;  %v2924_v13 = vpop.permute.xlu1 %1010  ;;  %s2926_s27 = spop %1756  ;;  %v1327_v1 = vsel %vm929_vm7, %v1324_v15, %v1326_v25  ;;  %v1341_v42 = vrot.slane %v2932_v32, 2 }
 0x13b   :  { %s2929_s28 = spop %1758  ;;  %v1442_v10 = vrot.slane %v2932_v32, 5  ;;  %v1375_v15 = vrot.slane %v2932_v32, 3 }
 0x13c   :  { %v1085_v50 = vadd.f32 %v2856_v63, %v1052_v29  ;;  %s1761_s29 = spop %1760  ;;  %v1242_v63 = vsel %vm967_vm8, %v1239_v8, %v1241_v60  ;;  %v1342_v41 = vsel %vm967_vm8, %v1340_v57, %v1341_v42 }
 0x13d   :  { %s630_s30 = sadd.f32 %s1761_s29, %s1751_s25  ;;  %s1763_s9 = spop %1762 }
 0x13e   :  { %v1119_v44 = vadd.f32 %v2870_v30, %v1085_v50  ;;  %s651_s2 = sadd.f32 %s1763_s9, %s1753_s26  ;;  %s1765_s10 = spop %1764 }
 0x13f   :  { %1668 = sst [smem:[#allocation18]] %s630_s30  ;;  %s1767_s11 = spop %1766  ;;  %1243 = vrot.lane.b32.xlu2 %v1240_v22, %s2066_s23  ;;  %1230 = vrot.lane.b32.xlu0 %v1224_v51, %s2066_s23 }
 0x140   :  { %1670 = sst [smem:[#allocation18 + $0x1]] %s651_s2  ;;  %1245 = vrot.lane.b32.xlu1 %v1242_v63, %s2066_s23  ;;  %v2943_v27 = vadd.f32 %v2883_v61, %v1119_v44  ;;  %s1769_s15 = spop %1768  ;;  %v2955_v61 = vpop.f32.mrf.mxu0  ;;  %v1457_v44 = vrot.slane %v2913_v19, 5 }
 0x141   :  { %s666_s12 = sadd.f32 %s1765_s10, %s2920_s0  ;;  %v2946_v33 = vpop.permute.xlu2 %1091  ;;  %v1013_v55 = vpop.permute.xlu0 %1012  ;;  %v1306_v5 = vrot.slane %v2955_v61, 1  ;;  %v1343_v50 = vrot.slane %v2955_v61, 2 }
 0x142   :  { %s679_s4 = sadd.f32 %s1767_s11, %s2926_s27  ;;  %v1019_v30 = vadd.f32 %v1013_v55, %v984_v17  ;;  %v2949_v16 = vpop.permute.xlu1 %1045 }
 0x143   :  { %1674 = sst [smem:[#allocation18 + $0x3]] %s666_s12  ;;  %v1307_v18 = vsel %vm929_vm7, %v1304_v58, %v1306_v5  ;;  %v1344_v22 = vsel %vm967_vm8, %v1341_v42, %v1343_v50  ;;  %v1358_v58 = vrot.slane %v2913_v19, 2 }
 0x144   :  { %1676 = sst [smem:[#allocation18 + $0x4]] %s679_s4 }
 0x145   :  { %s692_s16 = sadd.f32 %s1769_s15, %s2929_s28  ;;  %v1359_v56 = vsel %vm967_vm8, %v1357_v23, %v1358_v58  ;;  %v1525_v23 = vrot.slane %v2913_v19, 7 }
 0x147   :  { %1678 = sst [smem:[#allocation18 + $0x5]] %s692_s16  ;;  %1366 = vrot.lane.b32.xlu2 %v1360_v35, %s2066_s23  ;;  %1247 = vrot.lane.b32.xlu0 %v1241_v60, %s2066_s23 }
 0x148   :  { %1308 = vrot.lane.b32.xlu1 %v1305_v2, %s2064_s21 }
 0x149   :  { %v2963_v46 = vpop.permute.xlu2 %1128  ;;  %v1048_v4 = vpop.permute.xlu0 %1047 }
 0x14a   :  { %v1054_v54 = vadd.f32 %v1048_v4, %v1019_v30  ;;  %v2965_v52 = vpop.permute.xlu1 %1078  ;;  %v1473_v4 = vrot.slane %v2932_v32, 6 }
 0x14f   :  { %1413 = vrot.lane.b32.xlu2 %v1410_v26, %s2068_s24  ;;  %1310 = vrot.lane.b32.xlu0 %v1307_v18, %s2064_s21 }
 0x150   :  { %1312 = vrot.lane.b32.xlu1 %v1306_v5, %s2064_s21  ;;  %v1361_v5 = vsel %vm967_vm8, %v1358_v58, %v1360_v35 }
 0x151   :  { %v2977_v47 = vpop.permute.xlu2 %1163  ;;  %v1081_v53 = vpop.permute.xlu0 %1080 }
 0x152   :  { %v2980_v62 = vadd.f32 %v1081_v53, %v1054_v54  ;;  %v2982_v59 = vpop.permute.xlu1 %1112 }
 0x157   :  { %1430 = vrot.lane.b32.xlu2 %v1427_v39, %s2068_s24  ;;  %1328 = vrot.lane.b32.xlu0 %v1325_v0, %s2064_s21  ;;  %v1491_v0 = vrot.slane %v2913_v19, 6 }
 0x158   :  { %1330 = vrot.lane.b32.xlu1 %v1327_v1, %s2064_s21  ;;  %v1376_v1 = vsel %vm1002_vm9, %v1374_v20, %v1375_v15 }
 0x159   :  { %v956_v51 = vpop.permute.xlu2 %955  ;;  %v960_v36 = vpop.permute.xlu0 %959 }
 0x15a   :  { %v2996_v14 = vpop.permute.xlu1 %1148  ;;  %v966_v40 = vadd.f32 %v960_v36, %v2782_v9  ;;  %v964_v2 = vadd.f32 %v956_v51, %v2755_v28 }
 0x15f   :  { %1445 = vrot.lane.b32.xlu2 %v1442_v10, %s2063_s20  ;;  %1332 = vrot.lane.b32.xlu0 %v1326_v25, %s2064_s21  ;;  %v1377_v25 = vrot.slane %v2955_v61, 3 }
 0x160   :  { %1345 = vrot.lane.b32.xlu1 %v1342_v41, %s2066_s23  ;;  %v1391_v41 = vrot.slane %v2896_v3, 3 }
 0x161   :  { %v991_v8 = vpop.permute.xlu2 %990  ;;  %v995_v29 = vpop.permute.xlu0 %994  ;;  %v1378_v51 = vsel %vm1002_vm9, %v1375_v15, %v1377_v25 }
 0x162   :  { %v1001_v17 = vadd.f32 %v995_v29, %v966_v40  ;;  %v3008_v60 = vpop.permute.xlu1 %957  ;;  %v999_v54 = vadd.f32 %v991_v8, %v964_v2  ;;  %v1392_v40 = vrot.slane %v2913_v19, 3  ;;  %v1508_v29 = vrot.slane %v2932_v32, 7 }
 0x167   :  { %1460 = vrot.lane.b32.xlu2 %v1457_v44, %s2063_s20  ;;  %1347 = vrot.lane.b32.xlu0 %v1344_v22, %s2066_s23 }
 0x168   :  { %1349 = vrot.lane.b32.xlu1 %v1343_v50, %s2066_s23 }
 0x169   :  { %v1026_v9 = vpop.permute.xlu2 %1025  ;;  %v1030_v63 = vpop.permute.xlu0 %1029 }
 0x16a   :  { %v3018_v55 = vadd.f32 %v1030_v63, %v1001_v17  ;;  %v3020_v30 = vpop.permute.xlu1 %992  ;;  %v1034_v26 = vadd.f32 %v1026_v9, %v999_v54  ;;  %v1394_v9 = vrot.slane %v2940_v12, 3 }
 0x16c   :  { %v1395_v58 = vsel %vm1002_vm9, %v1392_v40, %v1394_v9 }
 0x16f   :  { %1478 = vrot.lane.b32.xlu2 %v1473_v4, %s2065_s22  ;;  %1362 = vrot.lane.b32.xlu0 %v1359_v56, %s2066_s23 }
 0x170   :  { %1364 = vrot.lane.b32.xlu1 %v1361_v5, %s2066_s23 }
 0x171   :  { %v1061_v18 = vpop.permute.xlu2 %1060  ;;  %v3035_v28 = vpop.permute.xlu0 %1064 }
 0x172   :  { %v1069_v53 = vadd.f32 %v1061_v18, %v1034_v26  ;;  %v3037_v34 = vpop.permute.xlu1 %1027  ;;  %v1428_v18 = vrot.slane %v2940_v12, 4 }
 0x174   :  { %v1100_v39 = vadd.f32 %v2946_v33, %v1069_v53  ;;  %v1175_v53 = vadd.f32 %v2943_v27, %v2809_v49  ;;  %v1443_v49 = vrot.slane %v2955_v61, 5 }
 0x176   :  { %v1137_v35 = vadd.f32 %v2963_v46, %v1100_v39 }
 0x177   :  { %1496 = vrot.lane.b32.xlu2 %v1491_v0, %s2065_s22  ;;  %1379 = vrot.lane.b32.xlu0 %v1376_v1, %s2067_s5 }
 0x178   :  { %1381 = vrot.lane.b32.xlu1 %v1378_v51, %s2067_s5  ;;  %v1172_v36 = vadd.f32 %v2977_v47, %v1137_v35  ;;  %v1393_v47 = vsel %vm1002_vm9, %v1391_v41, %v1392_v40 }
 0x179   :  { %v938_v57 = vpop.permute.xlu2 %937  ;;  %v3053_v33 = vpop.permute.xlu0 %1095 }
 0x17a   :  { %v945_v42 = vadd.f32 %v938_v57, %v2724_v11  ;;  %v1063_v46 = vpop.permute.xlu1 %1062  ;;  %v1178_v15 = vadd.f32 %v1172_v36, %v2806_v7  ;;  %v965_v36 = vadd.f32 %v3008_v60, %v2768_v43  ;;  %v3113_v43 = vpop.f32.mrf.mxu0 }
 0x17c   :  { %v983_v8 = vadd.f32 %v2906_v48, %v945_v42  ;;  %v1000_v41 = vadd.f32 %v3020_v30, %v965_v36 }
 0x17e   :  { %v1018_v17 = vadd.f32 %v2924_v13, %v983_v8 }
 0x17f   :  { %1513 = vrot.lane.b32.xlu2 %v1508_v29, %s2058_s3  ;;  %1383 = vrot.lane.b32.xlu0 %v1377_v25, %s2067_s5  ;;  %v1429_v25 = vsel %vm1037_vm10, %v1426_v31, %v1428_v18  ;;  %v1444_v31 = vsel %vm1072_vm11, %v1442_v10, %v1443_v49 }
 0x180   :  { %v1053_v11 = vadd.f32 %v2949_v16, %v1018_v17  ;;  %1396 = vrot.lane.b32.xlu1 %v1393_v47, %s2067_s5  ;;  %v1458_v17 = vrot.slane %v2940_v12, 5  ;;  %v1035_v47 = vadd.f32 %v3037_v34, %v1000_v41  ;;  %v1474_v34 = vrot.slane %v2955_v61, 6 }
 0x181   :  { %v1190_v50 = vpop.permute.xlu2 %1189  ;;  %v3068_v22 = vpop.permute.xlu0 %1193 }
 0x182   :  { %v1094_v48 = vpop.permute.xlu1 %1093  ;;  %v1086_v13 = vadd.f32 %v2965_v52, %v1053_v11  ;;  %v1411_v52 = vrot.slane %v2955_v61, 4  ;;  %v1198_v20 = vadd.f32 %v1190_v50, %v1175_v53  ;;  %v1070_v11 = vadd.f32 %v1063_v46, %v1035_v47  ;;  %v3146_v47 = vpop.f32.mrf.mxu3 }
 0x183   :  { %v1459_v10 = vsel %vm1072_vm11, %v1457_v44, %v1458_v17  ;;  %v1476_v46 = vrot.slane %v3113_v43, 6  ;;  %v1492_v53 = vrot.slane %v2940_v12, 6 }
 0x184   :  { %v1120_v63 = vadd.f32 %v2982_v59, %v1086_v13  ;;  %v1412_v59 = vsel %vm1037_vm10, %v1409_v45, %v1411_v52  ;;  %v1101_v50 = vadd.f32 %v1094_v48, %v1070_v11 }
 0x186   :  { %v1156_v2 = vadd.f32 %v2996_v14, %v1120_v63 }
 0x187   :  { %1530 = vrot.lane.b32.xlu2 %v1525_v23, %s2058_s3  ;;  %1398 = vrot.lane.b32.xlu0 %v1395_v58, %s2067_s5 }
 0x188   :  { %1400 = vrot.lane.b32.xlu1 %v1394_v9, %s2067_s5  ;;  %v1071_v9 = vadd.f32 %v3035_v28, %v3018_v55  ;;  %v1176_v58 = vadd.f32 %v1156_v2, %v2830_v38  ;;  %v1477_v28 = vsel %vm1104_vm12, %v1474_v34, %v1476_v46 }
 0x189   :  { %v1210_v16 = vpop.permute.xlu2 %1209  ;;  %v1115_v54 = vpop.permute.xlu0 %1114 }
 0x18a   :  { %v1131_v56 = vpop.permute.xlu1 %1130  ;;  %v1218_v45 = vadd.f32 %v1210_v16, %v1178_v15  ;;  %v1102_v44 = vadd.f32 %v3053_v33, %v1071_v9  ;;  %v1121_v48 = vadd.f32 %v1115_v54, %v2980_v62  ;;  %v1255_v33 = vld [vmem:[#allocation3] sm:$0xff] }
 0x18b   :  { %v1138_v60 = vadd.f32 %v1131_v56, %v1101_v50  ;;  %v1475_v56 = vsel %vm1104_vm12, %v1473_v4, %v1474_v34 }
 0x18f   :  { %1415 = vrot.lane.b32.xlu0 %v1412_v59, %s2068_s24 }
 0x190   :  { %1417 = vrot.lane.b32.xlu1 %v1411_v52, %s2068_s24 }
 0x191   :  { %v1227_v14 = vpop.permute.xlu2 %1226  ;;  %v1151_v5 = vpop.permute.xlu0 %1150 }
 0x192   :  { %v1166_v26 = vpop.permute.xlu1 %1165  ;;  %v1235_v39 = vadd.f32 %v1227_v14, %v1198_v20  ;;  %v1157_v16 = vadd.f32 %v1151_v5, %v1121_v48  ;;  %v1256_v14 = vld [vmem:[#allocation3 + $0x8] sm:$0xff]  ;;  %v1268_v20 = vrot.slane %v1255_v33, 5 }
 0x193   :  { %v1173_v63 = vadd.f32 %v1166_v26, %v1138_v60  ;;  %v884_v26 = vpop.f32.mrf.mxu2  ;;  %v1269_v4 = vrot.slane %v1256_v14, 5 }
 0x194   :  { %v1257_v27 = vmul.f32 %v1235_v39, %v1235_v39  ;;  %v1177_v54 = vadd.f32 %v1157_v16, %v2845_v6  ;;  %v1493_v6 = vsel %vm1104_vm12, %v1491_v0, %v1492_v53 }
 0x195   :  { %v1179_v55 = vadd.f32 %v1173_v63, %v2825_v24  ;;  %v1494_v24 = vrot.slane %v884_v26, 6  ;;  %v1526_v63 = vrot.slane %v2940_v12, 7 }
 0x197   :  { %1432 = vrot.lane.b32.xlu0 %v1429_v25, %s2068_s24  ;;  %v3132_v25 = vpop.f32.mrf.mxu1 }
 0x198   :  { %1434 = vrot.lane.b32.xlu1 %v1428_v18, %s2068_s24 }
 0x199   :  { %v1244_v35 = vpop.permute.xlu2 %1243  ;;  %v3096_v1 = vpop.permute.xlu0 %1213 }
 0x19a   :  { %v1252_v51 = vadd.f32 %v1244_v35, %v1218_v45  ;;  %v1192_v57 = vpop.permute.xlu1 %1191 }
 0x19b   :  { %v1199_v59 = vadd.f32 %v1192_v57, %v1176_v58  ;;  %v1270_v57 = vsel %vm1072_vm11, %v1268_v20, %v1269_v4  ;;  %v3159_v58 = vpop.f32.mrf.mxu3 }
 0x19c   :  { %v1260_v42 = vmul.f32 %v1252_v51, %v1252_v51  ;;  %v1200_v51 = vadd.f32 %v3068_v22, %v1177_v54 }
 0x19e   :  { %v1263_v7 = vadd.f32 %v1260_v42, %v1257_v27  ;;  %v1495_v42 = vsel %vm1104_vm12, %v1492_v53, %v1494_v24  ;;  %v1572_v24 = vrot.slane %v3159_v58, 1 }
 0x19f   :  { %1447 = vrot.lane.b32.xlu0 %v1444_v31, %s2063_s20  ;;  %v3148_v50 = vpop.f32.mrf.mxu1 }
 0x1a0   :  { %1449 = vrot.lane.b32.xlu1 %v1443_v49, %s2063_s20  ;;  %v1274_v49 = vmul.f32 %v1268_v20, %v1263_v7  ;;  %v1552_v33 = vrot.slane %v3148_v50, 1 }
 0x1a1   :  { %v1133_v40 = vpop.permute.xlu0 %1132 }
 0x1a2   :  { %v1212_v8 = vpop.permute.xlu1 %1211  ;;  %v1139_v52 = vadd.f32 %v1133_v40, %v1102_v44  ;;  %v1280_v0 = vrot.slane %v1274_v49, 3  ;;  %v1528_v44 = vrot.slane %v884_v26, 7 }
 0x1a3   :  { %v1219_v38 = vadd.f32 %v1212_v8, %v1179_v55  ;;  %v1509_v8 = vrot.slane %v2955_v61, 7 }
 0x1a4   :  { %v1529_v55 = vsel %vm1140_vm13, %v1526_v63, %v1528_v44  ;;  %v1605_v44 = vrot.slane %v3146_v47, 2 }
 0x1a7   :  { %1462 = vrot.lane.b32.xlu0 %v1459_v10, %s2063_s20 }
 0x1a8   :  { %1464 = vrot.lane.b32.xlu1 %v1458_v17, %s2063_s20  ;;  %v1511_v17 = vrot.slane %v3113_v43, 7 }
 0x1a9   :  { %v1168_v30 = vpop.permute.xlu0 %1167 }
 0x1aa   :  { %v1229_v13 = vpop.permute.xlu1 %1228  ;;  %v1174_v18 = vadd.f32 %v1168_v30, %v1139_v52  ;;  %v1512_v9 = vsel %vm1140_vm13, %v1509_v8, %v1511_v17  ;;  %v1527_v52 = vsel %vm1140_vm13, %v1525_v23, %v1526_v63  ;;  %v3174_v23 = vpop.f32.mrf.mxu3 }
 0x1ab   :  { %v1236_v62 = vadd.f32 %v1229_v13, %v1199_v59  ;;  %v3166_v59 = vpop.f32.mrf.mxu1  ;;  %v1574_v54 = vrot.slane %v3174_v23, 1 }
 0x1ac   :  { %v1180_v45 = vadd.f32 %v1174_v18, %v2843_v37  ;;  %v1554_v14 = vrot.slane %v3166_v59, 1 }
 0x1ad   :  { %v1258_v39 = vmul.f32 %v1236_v62, %v1236_v62 }
 0x1ae   :  { %v1220_v37 = vadd.f32 %v3096_v1, %v1180_v45  ;;  %v1510_v1 = vsel %vm1140_vm13, %v1508_v29, %v1509_v8  ;;  %v1555_v18 = vsel %vm929_vm7, %v1552_v33, %v1554_v14  ;;  %v1571_v8 = vrot.slane %v3146_v47, 1 }
 0x1af   :  { %1480 = vrot.lane.b32.xlu0 %v1475_v56, %s2065_s22 }
 0x1b0   :  { %1482 = vrot.lane.b32.xlu1 %v1477_v28, %s2065_s22 }
 0x1b1   :  { %v1231_v2 = vpop.permute.xlu0 %1230 }
 0x1b2   :  { %v1246_v5 = vpop.permute.xlu1 %1245  ;;  %v1237_v31 = vadd.f32 %v1231_v2, %v1200_v51  ;;  %v1591_v51 = vrot.slane %v3166_v59, 2 }
 0x1b3   :  { %v1253_v15 = vadd.f32 %v1246_v5, %v1219_v38  ;;  %v1367_v38 = vpop.permute.xlu2 %1366 }
 0x1b4   :  { %v1259_v11 = vmul.f32 %v1237_v31, %v1237_v31 }
 0x1b5   :  { %v1261_v35 = vmul.f32 %v1253_v15, %v1253_v15  ;;  %v1575_v15 = vsel %vm929_vm7, %v1572_v24, %v1574_v54 }
 0x1b7   :  { %v1264_v27 = vadd.f32 %v1261_v35, %v1258_v39  ;;  %1498 = vrot.lane.b32.xlu0 %v1493_v6, %s2065_s22  ;;  %v1551_v6 = vrot.slane %v3132_v25, 1 }
 0x1b8   :  { %1500 = vrot.lane.b32.xlu1 %v1495_v42, %s2065_s22 }
 0x1b9   :  { %v1275_v36 = vmul.f32 %v1270_v57, %v1264_v27  ;;  %v1248_v41 = vpop.permute.xlu0 %1247  ;;  %v1589_v27 = vrot.slane %v3148_v50, 2 }
 0x1ba   :  { %v1254_v22 = vadd.f32 %v1248_v41, %v1220_v37  ;;  %v1309_v40 = vpop.permute.xlu1 %1308 }
 0x1bb   :  { %v1281_v7 = vrot.slane %v1275_v36, 3  ;;  %v1317_v62 = vadd.f32 %v1309_v40, %v2909_v21  ;;  %v1414_v39 = vpop.permute.xlu2 %1413  ;;  %v1592_v42 = vsel %vm967_vm8, %v1589_v27, %v1591_v51  ;;  %v1608_v36 = vrot.slane %v3174_v23, 2 }
 0x1bc   :  { %v1262_v10 = vmul.f32 %v1254_v22, %v1254_v22 }
 0x1bd   :  { %v1282_v60 = vsel %vm1002_vm9, %v1280_v0, %v1281_v7  ;;  %v1606_v0 = vrot.slane %v3159_v58, 2 }
 0x1be   :  { %v1265_v30 = vadd.f32 %v1262_v10, %v1259_v11  ;;  %v1287_v16 = vsel %vm156_vm0, %v1282_v60, 0.0  ;;  %v1588_v60 = vrot.slane %v3132_v25, 2 }
 0x1bf   :  { %1515 = vrot.lane.b32.xlu0 %v1510_v1, %s2058_s3 }
 0x1c0   :  { %v1276_v43 = vmul.f32 %v1269_v4, %v1265_v30  ;;  %1517 = vrot.lane.b32.xlu1 %v1512_v9, %s2058_s3 }
 0x1c1   :  { %v1311_v13 = vpop.permute.xlu0 %1310 }
 0x1c2   :  { %v1283_v34 = vrot.slane %v1276_v43, 3  ;;  %v1313_v46 = vpop.permute.xlu1 %1312  ;;  %v1318_v45 = vadd.f32 %v1311_v13, %v2932_v32  ;;  %v1553_v32 = vsel %vm929_vm7, %v1551_v6, %v1552_v33  ;;  %v1590_v13 = vsel %vm967_vm8, %v1588_v60, %v1589_v27 }
 0x1c3   :  { %v1319_v21 = vadd.f32 %v1313_v46, %v2955_v61  ;;  %v1431_v40 = vpop.permute.xlu2 %1430 }
 0x1c4   :  { %v1284_v48 = vsel %vm1002_vm9, %v1281_v7, %v1283_v34  ;;  %v1609_v7 = vsel %vm967_vm8, %v1606_v0, %v1608_v36 }
 0x1c5   :  { %v1288_v29 = vsel %vm156_vm0, %v1284_v48, 0.0 }
 0x1c6   :  { %v1289_v56 = vadd.f32 %v1288_v29, %v1287_v16  ;;  %v1607_v29 = vsel %vm967_vm8, %v1605_v44, %v1606_v0 }
 0x1c7   :  { %1532 = vrot.lane.b32.xlu0 %v1527_v52, %s2058_s3 }
 0x1c8   :  { %1534 = vrot.lane.b32.xlu1 %v1529_v55, %s2058_s3  ;;  %1290 = vadd.xlane.f32.xlu2 %v1289_v56 }
 0x1c9   :  { %v1329_v28 = vpop.permute.xlu0 %1328 }
 0x1ca   :  { %v1331_v26 = vpop.permute.xlu1 %1330  ;;  %v1337_v31 = vadd.f32 %v1329_v28, %v2896_v3  ;;  %v1573_v3 = vsel %vm929_vm7, %v1571_v8, %v1572_v24 }
 0x1cb   :  { %v1338_v61 = vadd.f32 %v1331_v26, %v2913_v19  ;;  %v1446_v9 = vpop.permute.xlu2 %1445 }
 0x1cf   :  { %1558 = vrot.lane.b32.xlu0 %v1555_v18, %s2064_s21 }
 0x1d0   :  { %1560 = vrot.lane.b32.xlu1 %v1554_v14, %s2064_s21 }
 0x1d1   :  { %v1333_v2 = vpop.permute.xlu0 %1332 }
 0x1d2   :  { %v1339_v5 = vadd.f32 %v1333_v2, %v2940_v12  ;;  %v1346_v4 = vpop.permute.xlu1 %1345 }
 0x1d3   :  { %v1354_v53 = vadd.f32 %v1346_v4, %v1317_v62 }
 0x1d4   :  { %v1373_v20 = vadd.f32 %v1367_v38, %v1339_v5 }
 0x1d7   :  { %1578 = vrot.lane.b32.xlu0 %v1575_v15, %s2064_s21 }
 0x1d8   :  { %1580 = vrot.lane.b32.xlu1 %v1574_v54, %s2064_s21  ;;  %v1461_v54 = vpop.permute.xlu2 %1460 }
 0x1d9   :  { %v1348_v35 = vpop.permute.xlu0 %1347 }
 0x1da   :  { %v1355_v12 = vadd.f32 %v1348_v35, %v1318_v45  ;;  %v1350_v57 = vpop.permute.xlu1 %1349 }
 0x1db   :  { %v1356_v49 = vadd.f32 %v1350_v57, %v1319_v21 }
 0x1df   :  { %1595 = vrot.lane.b32.xlu0 %v1592_v42, %s2066_s23 }
 0x1e0   :  { %1597 = vrot.lane.b32.xlu1 %v1591_v51, %s2066_s23  ;;  %1556 = vrot.lane.b32.xlu2 %v1553_v32, %s2064_s21  ;;  %v1479_v24 = vpop.permute.xlu2 %1478 }
 0x1e1   :  { %v1363_v37 = vpop.permute.xlu0 %1362 }
 0x1e2   :  { %v1371_v41 = vadd.f32 %v1363_v37, %v1337_v31  ;;  %v1365_v22 = vpop.permute.xlu1 %1364 }
 0x1e3   :  { %v1372_v17 = vadd.f32 %v1365_v22, %v1338_v61 }
 0x1e7   :  { %1612 = vrot.lane.b32.xlu0 %v1609_v7, %s2066_s23 }
 0x1e8   :  { %1614 = vrot.lane.b32.xlu1 %v1608_v36, %s2066_s23  ;;  %1576 = vrot.lane.b32.xlu2 %v1573_v3, %s2064_s21 }
 0x1e9   :  { %v1380_v19 = vpop.permute.xlu0 %1379 }
 0x1ea   :  { %v1388_v11 = vadd.f32 %v1380_v19, %v1354_v53  ;;  %v1382_v10 = vpop.permute.xlu1 %1381 }
 0x1eb   :  { %v1389_v30 = vadd.f32 %v1382_v10, %v1355_v12 }
 0x1ec   :  { %v1422_v1 = vadd.f32 %v1414_v39, %v1388_v11  ;;  %v1497_v39 = vpop.permute.xlu2 %1496 }
 0x1ee   :  { %v1454_v43 = vadd.f32 %v1446_v9, %v1422_v1 }
 0x1f0   :  { %1593 = vrot.lane.b32.xlu2 %v1590_v13, %s2066_s23  ;;  %v1487_v1 = vadd.f32 %v1479_v24, %v1454_v43 }
 0x1f1   :  { %v1384_v34 = vpop.permute.xlu0 %1383 }
 0x1f2   :  { %v1390_v46 = vadd.f32 %v1384_v34, %v1356_v49  ;;  %v1397_v63 = vpop.permute.xlu1 %1396 }
 0x1f3   :  { %v1405_v48 = vadd.f32 %v1397_v63, %v1371_v41 }
 0x1f4   :  { %v1514_v51 = vpop.permute.xlu2 %1513 }
 0x1f5   :  { %v1439_v16 = vadd.f32 %v1431_v40, %v1405_v48 }
 0x1f7   :  { %v1469_v19 = vadd.f32 %v1461_v54, %v1439_v16 }
 0x1f8   :  { %1610 = vrot.lane.b32.xlu2 %v1607_v29, %s2066_s23 }
 0x1f9   :  { %v1399_v52 = vpop.permute.xlu0 %1398  ;;  %v1505_v63 = vadd.f32 %v1497_v39, %v1469_v19 }
 0x1fa   :  { %v1406_v56 = vadd.f32 %v1399_v52, %v1372_v17  ;;  %v1401_v55 = vpop.permute.xlu1 %1400 }
 0x1fb   :  { %v1407_v28 = vadd.f32 %v1401_v55, %v1373_v20 }
 0x1fc   :  { %v1531_v49 = vpop.permute.xlu2 %1530 }
 0x201   :  { %v1416_v14 = vpop.permute.xlu0 %1415 }
 0x202   :  { %v1423_v26 = vadd.f32 %v1416_v14, %v1389_v30  ;;  %v1418_v33 = vpop.permute.xlu1 %1417 }
 0x203   :  { %v1424_v18 = vadd.f32 %v1418_v33, %v1390_v46 }
 0x209   :  { %v1433_v38 = vpop.permute.xlu0 %1432 }
 0x20a   :  { %v1440_v62 = vadd.f32 %v1433_v38, %v1406_v56  ;;  %v1435_v2 = vpop.permute.xlu1 %1434  ;;  %v1522_v56 = vadd.f32 %v1514_v51, %v1487_v1 }
 0x20b   :  { %v1441_v5 = vadd.f32 %v1435_v2, %v1407_v28  ;;  %v1623_v2 = vld [vmem:[#allocation3 + $0x18] sm:$0xff] }
 0x20c   :  { %v1542_v43 = vadd.f32 %v1522_v56, %v3132_v25 }
 0x211   :  { %v1448_v4 = vpop.permute.xlu0 %1447 }
 0x212   :  { %v1450_v53 = vpop.permute.xlu1 %1449  ;;  %v1455_v11 = vadd.f32 %v1448_v4, %v1423_v26  ;;  %v1539_v26 = vadd.f32 %v1531_v49, %v1505_v63 }
 0x213   :  { %v1456_v10 = vadd.f32 %v1450_v53, %v1424_v18 }
 0x214   :  { %v1545_v24 = vadd.f32 %v1539_v26, %v3146_v47 }
 0x219   :  { %v1463_v15 = vpop.permute.xlu0 %1462 }
 0x21a   :  { %v1465_v45 = vpop.permute.xlu1 %1464  ;;  %v1470_v60 = vadd.f32 %v1463_v15, %v1440_v62  ;;  %v1622_v62 = vld [vmem:[#allocation3 + $0x10] sm:$0xff] }
 0x21b   :  { %v1471_v9 = vadd.f32 %v1465_v45, %v1441_v5  ;;  %v1635_v39 = vrot.slane %v1622_v62, 5 }
 0x221   :  { %v1481_v21 = vpop.permute.xlu0 %1480 }
 0x222   :  { %v1483_v35 = vpop.permute.xlu1 %1482  ;;  %v1488_v30 = vadd.f32 %v1481_v21, %v1455_v11  ;;  %v1636_v21 = vrot.slane %v1623_v2, 5 }
 0x223   :  { %v1489_v13 = vadd.f32 %v1483_v35, %v1456_v10 }
 0x229   :  { %v1499_v12 = vpop.permute.xlu0 %1498 }
 0x22a   :  { %v1501_v20 = vpop.permute.xlu1 %1500  ;;  %v1506_v34 = vadd.f32 %v1499_v12, %v1470_v60 }
 0x22b   :  { %v1507_v44 = vadd.f32 %v1501_v20, %v1471_v9 }
 0x231   :  { %v1516_v57 = vpop.permute.xlu0 %1515 }
 0x232   :  { %v1518_v6 = vpop.permute.xlu1 %1517  ;;  %v1523_v46 = vadd.f32 %v1516_v57, %v1488_v30 }
 0x233   :  { %v1524_v48 = vadd.f32 %v1518_v6, %v1489_v13 }
 0x234   :  { %v1543_v16 = vadd.f32 %v1523_v46, %v3148_v50 }
 0x235   :  { %v1544_v33 = vadd.f32 %v1524_v48, %v3166_v59 }
 0x239   :  { %v1533_v27 = vpop.permute.xlu0 %1532 }
 0x23a   :  { %v1535_v42 = vpop.permute.xlu1 %1534  ;;  %v1540_v52 = vadd.f32 %v1533_v27, %v1506_v34  ;;  %v1637_v27 = vsel %vm1072_vm11, %v1635_v39, %v1636_v21 }
 0x23b   :  { %v1291_v32 = vpop.xlane.xlu2 %1290  ;;  %v1541_v28 = vadd.f32 %v1535_v42, %v1507_v44 }
 0x23c   :  { %v1292_v31 = vrot.slane %v1291_v32, 4  ;;  %v1546_v38 = vadd.f32 %v1540_v52, %v3159_v58 }
 0x23d   :  { %v1547_v5 = vadd.f32 %v1541_v28, %v3174_v23 }
 0x23e   :  { %v1293_v61 = vadd.f32 %v1292_v31, %v1291_v32 }
 0x240   :  { %v1294_v37 = vrot.slane %v1293_v61, 2 }
 0x241   :  { %v1559_v36 = vpop.permute.xlu0 %1558 }
 0x242   :  { %v1561_v41 = vpop.permute.xlu1 %1560  ;;  %v1295_v22 = vadd.f32 %v1294_v37, %v1293_v61  ;;  %v1566_v18 = vadd.f32 %v1559_v36, %v1543_v16 }
 0x243   :  { %v1557_v40 = vpop.permute.xlu2 %1556  ;;  %v1567_v54 = vadd.f32 %v1561_v41, %v1544_v33 }
 0x244   :  { %v1296_v8 = vrot.slane %v1295_v22, 1  ;;  %v1565_v4 = vadd.f32 %v1557_v40, %v1542_v43 }
 0x246   :  { %v1297_v17 = vadd.f32 %v1296_v8, %v1295_v22 }
 0x248   :  { %1770 = vpush %v1297_v17 }
 0x249   :  { %v1579_v0 = vpop.permute.xlu0 %1578 }
 0x24a   :  { %v1581_v7 = vpop.permute.xlu1 %1580  ;;  %v1586_v53 = vadd.f32 %v1579_v0, %v1546_v38 }
 0x24b   :  { %v1577_v3 = vpop.permute.xlu2 %1576  ;;  %v1587_v45 = vadd.f32 %v1581_v7, %v1547_v5 }
 0x24c   :  { %v1585_v35 = vadd.f32 %v1577_v3, %v1545_v24 }
 0x251   :  { %v1596_v29 = vpop.permute.xlu0 %1595 }
 0x252   :  { %v1598_v55 = vpop.permute.xlu1 %1597  ;;  %v1603_v15 = vadd.f32 %v1596_v29, %v1566_v18 }
 0x253   :  { %v1594_v14 = vpop.permute.xlu2 %1593  ;;  %v1604_v50 = vadd.f32 %v1598_v55, %v1567_v54 }
 0x254   :  { %v1602_v51 = vadd.f32 %v1594_v14, %v1565_v4  ;;  %v1625_v57 = vmul.f32 %v1603_v15, %v1603_v15 }
 0x255   :  { %v1626_v23 = vmul.f32 %v1604_v50, %v1604_v50 }
 0x256   :  { %v1624_v47 = vmul.f32 %v1602_v51, %v1602_v51 }
 0x259   :  { %v1613_v59 = vpop.permute.xlu0 %1612 }
 0x25a   :  { %v1620_v25 = vadd.f32 %v1613_v59, %v1586_v53  ;;  %v1615_v12 = vpop.permute.xlu1 %1614 }
 0x25b   :  { %v1621_v58 = vadd.f32 %v1615_v12, %v1587_v45  ;;  %v1611_v20 = vpop.permute.xlu2 %1610 }
 0x25c   :  { %v1628_v6 = vmul.f32 %v1620_v25, %v1620_v25  ;;  %v1619_v49 = vadd.f32 %v1611_v20, %v1585_v35 }
 0x25d   :  { %v1629_v42 = vmul.f32 %v1621_v58, %v1621_v58 }
 0x25e   :  { %v1631_v32 = vadd.f32 %v1628_v6, %v1625_v57  ;;  %v1627_v31 = vmul.f32 %v1619_v49, %v1619_v49 }
 0x25f   :  { %v1632_v61 = vadd.f32 %v1629_v42, %v1626_v23 }
 0x260   :  { %v1642_v37 = vmul.f32 %v1637_v27, %v1631_v32  ;;  %v1630_v36 = vadd.f32 %v1627_v31, %v1624_v47 }
 0x261   :  { %v1643_v41 = vmul.f32 %v1636_v21, %v1632_v61 }
 0x262   :  { %v1648_v22 = vrot.slane %v1642_v37, 3  ;;  %v1641_v40 = vmul.f32 %v1635_v39, %v1630_v36 }
 0x263   :  { %v1650_v8 = vrot.slane %v1643_v41, 3 }
 0x264   :  { %v1647_v17 = vrot.slane %v1641_v40, 3 }
 0x265   :  { %v1651_v0 = vsel %vm1002_vm9, %v1648_v22, %v1650_v8 }
 0x266   :  { %v1649_v7 = vsel %vm1002_vm9, %v1647_v17, %v1648_v22  ;;  %v1655_v3 = vsel %vm156_vm0, %v1651_v0, 0.0 }
 0x267   :  { %v1654_v19 = vsel %vm156_vm0, %v1649_v7, 0.0 }
 0x268   :  { %v1656_v11 = vadd.f32 %v1655_v3, %v1654_v19 }
 0x26a   :  { %1657 = vadd.xlane.f32.xlu2 %v1656_v11 }
 0x279   :  { %s1771_s3 = spop %1770 }
 0x2dd   :  { %v1658_v10 = vpop.xlane.xlu2 %1657 }
 0x2de   :  { %v1659_v60 = vrot.slane %v1658_v10, 4 }
 0x2e0   :  { %v1660_v30 = vadd.f32 %v1659_v60, %v1658_v10 }
 0x2e2   :  { %v1661_v1 = vrot.slane %v1660_v30, 2 }
 0x2e4   :  { %v1662_v9 = vadd.f32 %v1661_v1, %v1660_v30 }
 0x2e6   :  { %v1663_v13 = vrot.slane %v1662_v9, 1 }
 0x2e8   :  { %v1664_v34 = vadd.f32 %v1663_v13, %v1662_v9 }
 0x2ea   :  { %1772 = vpush %v1664_v34 }
 0x31b   :  { %s1773_s19 = spop %1772 }
 0x31c   :  { %s1666_s6 = sadd.f32 %s1773_s19, %s1771_s3 }
 0x31e   :  { %1672 = sst [smem:[#allocation18 + $0x2]] %s1666_s6 }
 0x31f   :  { %1687 = dma.smem_to_hbm %s2069_s7, 16, %s1685_s1, [#allocation6]  }
 0x320   :  { %2046 = dma.done.wait [#allocation6], 16  }
 0x321   :  { %2047 = vsyncadd [#allocation6], 4294967280 }
 0x322   :  { %1692 = sfence }
 0x323   :  { %1693 = vsyncpa [#allocation5], 1 }
 0x324   :  { %1694 = vsyncpa [#allocation9], 1 }
 0x325   :  { %1695 = vsyncpa [#allocation12], 1 }
 0x326   :  { %1696 = vsyncpa [#allocation15], 1 }
 0x327   :  { %1697 = vsyncpa [#allocation6], 1 }
 0x328   :  { %1698 = vsyncpa [#allocation7], 1 }

</bundles_post_ra>
